<compile_context>
chip_gen: v5e
topology: v5e:2x2
jax: 0.10.0
libtpu: 0.0.40
codegen_flags: <defaults>
</compile_context>

<pallas_src>
import functools

import jax
import jax.numpy as jnp
from jax import lax
from jax.experimental import pallas as pl
from jax.experimental.pallas import tpu as pltpu

VMEM_SPEC = pl.BlockSpec(memory_space=pltpu.MemorySpace.VMEM)
SMEM_SPEC = pl.BlockSpec(memory_space=pltpu.MemorySpace.SMEM)

# --- packed-slab layout ----------------------------------------------------
# weight slab (bf16, (6 + n_gcn + 6, H, H)):
#   0 ea_w_u | 1 ea_w_v | 2 rm_w_hv | 3 rm_w_hid | 4 rm_w2_a | 5 rm_w2_b
#   6..6+n_gcn-1 gcn_w | then gru_wi (r,z,n) | then gru_wh (r,z,n)
# bias slab (f32, (5 + n_gcn + 6, H)):
#   0 ea_b1 | 1 ea_w2 (1,H second attention layer) | 2 rm_b1 | 3 rm_b2_a | 4 rm_b2_b
#   5..5+n_gcn-1 gcn_b | then gru_bi (r,z,n) | then gru_bh (r,z,n)
W_EA_U, W_EA_V, W_RM_HV, W_RM_HID, W_RM2A, W_RM2B, W_GCN = 0, 1, 2, 3, 4, 5, 6
B_EA1, B_EAW2, B_RM1, B_RM2A, B_RM2B, B_GCN = 0, 1, 2, 3, 4, 5


# ----------------------------- fused MPNN kernel -----------------------------

def _mpnn_kernel(*refs, n_gcn, has_vp, sample_mode):
    """Fused _NaiveMPNN forward.

    sample_mode: 0 = no sample; 1 = draw sample from (mu, lsgms, eps) preamble;
                 2 = draw posterior sample + both KL terms (training epilogue fused in).
    """
    f32 = jnp.float32
    bf16 = jnp.bfloat16
    n_out = 4 if sample_mode == 2 else 2
    out_refs = refs[-n_out:]
    it = iter(refs[:-n_out])

    hv_b = next(it)[...]                                     # (N, H) bf16
    if has_vp:
        pos = next(it)[...].astype(bf16)                     # (N, 3)
        vp_w_hv = next(it)[...]                              # (H, H) bf16
        vp_w_pos = next(it)[...]                             # (3, H) bf16
        vp_b = next(it)[...]                                 # (1, H) f32
        # hvp = tanh(vp_linear([hv | pos]))  -- concat removed via weight split.
        hv_f32 = jnp.tanh(jnp.dot(hv_b, vp_w_hv, preferred_element_type=f32)
                          + jnp.dot(pos, vp_w_pos, preferred_element_type=f32)
                          + vp_b)
        hv_b = hv_f32.astype(bf16)
    else:
        hv_f32 = hv_b.astype(f32)

    # --- fused sampling / KL preamble (replaces the standalone epilogue kernels) ---
    sample = None
    kldz = kld0 = None
    if sample_mode == 2:
        pr_mu = next(it)[...]                                # (N, H) f32
        pr_ls = next(it)[...]
        po_mu = next(it)[...]
        po_ls = next(it)[...]
        eps = next(it)[...]
        sample = po_mu + jnp.exp(0.5 * po_ls) * eps          # reparameterized (T = 1)
        var0 = jnp.exp(po_ls)
        var1 = jnp.exp(pr_ls)
        a = (var0 + 1e-5) / (var1 + 1e-5)
        b = (pr_mu - po_mu) ** 2 / (var1 + 1e-5)
        c = jnp.log((var1 + 1e-5) / (var0 + 1e-5) + 1e-5)
        kldz = 0.5 * jnp.sum(a + b - 1.0 + c, axis=1, keepdims=True)
        kld0 = 0.5 * jnp.sum(var1 + pr_mu * pr_mu - 1.0 - pr_ls, axis=1, keepdims=True)
    elif sample_mode == 1:
        mu = next(it)[...]
        ls = next(it)[...]
        eps = next(it)[...]
        sample = mu + jnp.exp(0.5 * ls) * eps

    he = next(it)[...]                                       # (E, he_dim) bf16
    vew1 = next(it)[...]                                     # (N, E) bf16
    vew2 = next(it)[...]                                     # (N, E) bf16
    w_ref = next(it)                                         # (Kw, H, H) bf16 slab
    biases = next(it)[...]                                   # (Kb, H) f32 slab
    ea_w_e = next(it)[...]                                   # (he_dim, H) bf16
    ea_b2 = next(it)[0]                                      # SMEM scalar f32

    w_gru_wi = W_GCN + n_gcn
    w_gru_wh = w_gru_wi + 3
    b_gru_bi = B_GCN + n_gcn
    b_gru_bh = b_gru_bi + 3

    # --- edge attention MLP (concat eliminated via column-split of its first layer) ---
    hv1 = lax.dot_general(vew1, hv_b, (((0,), (0,)), ((), ())),
                          preferred_element_type=f32)        # (E, H) = vew1.T @ hv
    hv2 = lax.dot_general(vew2, hv_b, (((0,), (0,)), ((), ())),
                          preferred_element_type=f32)
    hv1b, hv2b = hv1.astype(bf16), hv2.astype(bf16)
    ea_w_u, ea_w_v = w_ref[W_EA_U], w_ref[W_EA_V]
    he_p = jnp.dot(he, ea_w_e, preferred_element_type=f32)   # shared across both halves
    p1 = jnp.dot(hv1b, ea_w_u, preferred_element_type=f32)
    p2 = jnp.dot(hv2b, ea_w_u, preferred_element_type=f32)
    q1 = jnp.dot(hv1b, ea_w_v, preferred_element_type=f32)
    q2 = jnp.dot(hv2b, ea_w_v, preferred_element_type=f32)
    ea_b1 = biases[B_EA1:B_EA1 + 1]
    mid_a = jnp.maximum(p1 + he_p + q2 + ea_b1, 0.0)         # edges half 1: [hv1|he|hv2]
    mid_b = jnp.maximum(p2 + he_p + q1 + ea_b1, 0.0)         # edges half 2: [hv2|he|hv1]
    ea_w2 = biases[B_EAW2:B_EAW2 + 1].astype(bf16)           # (1, H)
    # Lane-dense (1, E) per-edge attention weights; never leave VMEM/vregs.
    ew_a = jax.nn.sigmoid(
        lax.dot_general(ea_w2, mid_a.astype(bf16), (((1,), (1,)), ((), ())),
                        preferred_element_type=f32) + ea_b2)
    ew_b = jax.nn.sigmoid(
        lax.dot_general(ea_w2, mid_b.astype(bf16), (((1,), (1,)), ((), ())),
                        preferred_element_type=f32) + ea_b2)

    # --- adjacency: adj = vew_u @ diag(ew) @ vew_v.T, split into the two halves ---
    adj = (lax.dot_general(vew1 * ew_a.astype(bf16), vew2, (((1,), (1,)), ((), ())),
                           preferred_element_type=f32)
           + lax.dot_general(vew2 * ew_b.astype(bf16), vew1, (((1,), (1,)), ((), ())),
                             preferred_element_type=f32))
    # normalize_adj_rc: A / ((sqrt(rowsum)+eps)*(sqrt(colsum)+eps)).
    # XLU reductions (not degenerate MXU matmuls); EUP approximate reciprocal.
    row = jnp.sum(adj, axis=1, keepdims=True)                # (N, 1)
    col = jnp.sum(adj, axis=0, keepdims=True)                # (1, N)
    eps_n = 1e-6
    inv_r = pl.reciprocal(jnp.sqrt(row) + eps_n, approx=True)
    inv_c = pl.reciprocal(jnp.sqrt(col) + eps_n, approx=True)
    adj_b = (adj * inv_r * inv_c).astype(bf16)

    # --- 4x (GCN message -> GRUCell update) -------------------------------------
    # Per-gate weights at toy H (<128); TODO(synk): fuse to (H,3H) when H % 128 == 0.
    wi_r, wi_z, wi_n = w_ref[w_gru_wi], w_ref[w_gru_wi + 1], w_ref[w_gru_wi + 2]
    wh_r, wh_z, wh_n = w_ref[w_gru_wh], w_ref[w_gru_wh + 1], w_ref[w_gru_wh + 2]
    bi_r = biases[b_gru_bi:b_gru_bi + 1]
    bi_z = biases[b_gru_bi + 1:b_gru_bi + 2]
    bi_n = biases[b_gru_bi + 2:b_gru_bi + 3]
    bh_r = biases[b_gru_bh:b_gru_bh + 1]
    bh_z = biases[b_gru_bh + 1:b_gru_bh + 2]
    bh_n = biases[b_gru_bh + 2:b_gru_bh + 3]

    h = hv_f32 + sample if sample is not None else hv_f32    # hvs_ftr (f32 state)
    for i in range(n_gcn):
        hb = h.astype(bf16)
        xw = jnp.dot(hb, w_ref[W_GCN + i], preferred_element_type=f32)
        msg = jnp.maximum(
            jnp.dot(adj_b, xw.astype(bf16), preferred_element_type=f32)
            + biases[B_GCN + i:B_GCN + i + 1], 0.0)
        mb = msg.astype(bf16)
        r = jax.nn.sigmoid(jnp.dot(mb, wi_r, preferred_element_type=f32) + bi_r
                           + jnp.dot(hb, wh_r, preferred_element_type=f32) + bh_r)
        z = jax.nn.sigmoid(jnp.dot(mb, wi_z, preferred_element_type=f32) + bi_z
                           + jnp.dot(hb, wh_z, preferred_element_type=f32) + bh_z)
        n_g = jnp.tanh(jnp.dot(mb, wi_n, preferred_element_type=f32) + bi_n
                       + r * (jnp.dot(hb, wh_n, preferred_element_type=f32) + bh_n))
        h = (1.0 - z) * n_g + z * h

    # --- remap MLP ([hv|hidden] concat removed via weight split); dropout=identity ---
    hb = h.astype(bf16)
    mid = jnp.maximum(jnp.dot(hv_b, w_ref[W_RM_HV], preferred_element_type=f32)
                      + jnp.dot(hb, w_ref[W_RM_HID], preferred_element_type=f32)
                      + biases[B_RM1:B_RM1 + 1], 0.0)
    midb = mid.astype(bf16)
    # Two lane-dense (N, H) output halves (mu / lsgms) instead of one (N, 2H) store.
    out_refs[0][...] = (jnp.dot(midb, w_ref[W_RM2A], preferred_element_type=f32)
                        + biases[B_RM2A:B_RM2A + 1])
    out_refs[1][...] = (jnp.dot(midb, w_ref[W_RM2B], preferred_element_type=f32)
                        + biases[B_RM2B:B_RM2B + 1])
    if sample_mode == 2:
        out_refs[2][...] = kldz
        out_refs[3][...] = kld0


def _mpnn_cost_estimate(n, e, h, he_dim, n_gcn, has_vp, sample_mode):
    flops = 0
    if has_vp:
        flops += 2 * n * h * h + 2 * n * 3 * h
    flops += 2 * (2 * n * e * h)                        # incidence projections
    flops += 2 * e * he_dim * h                         # edge-feature projection
    flops += 4 * (2 * e * h * h)                        # p1, p2, q1, q2
    flops += 2 * (2 * e * h)                            # edge-weight heads
    flops += 2 * (2 * n * e * n)                        # adjacency halves
    flops += n_gcn * (2 * n * h * h + 2 * n * n * h + 6 * (2 * n * h * h))
    flops += 4 * (2 * n * h * h)                        # remap (two H-wide heads)
    transcendentals = 2 * e + n_gcn * 3 * n * h + (6 * n * h if sample_mode else 0)
    bytes_accessed = (
        2 * (n * h + e * he_dim + 2 * n * e)            # bf16 activations / incidence
        + 2 * (6 + n_gcn + 6) * h * h                   # bf16 weight slab
        + 4 * (5 + n_gcn + 6) * h + 2 * he_dim * h + 4  # bias slab + ea_w_e + scalar
        + 4 * (2 * n * h + (2 * n if sample_mode == 2 else 0))
        + (4 * 5 * n * h if sample_mode == 2 else 4 * 3 * n * h if sample_mode else 0))
    return pl.CostEstimate(flops=flops, transcendentals=transcendentals,
                           bytes_accessed=bytes_accessed)


def naive_mpnn_forward(p, hv, he, vew1, vew2, hv_dim, vp=None, z_draw=None, z_kld=None):
    """One fused pallas_call for a _NaiveMPNN forward (+ optional fused vp / sample / KL)."""
    n_vertex = hv.shape[0]
    n_edge = he.shape[0]
    n_gcn = p["w_slab"].shape[0] - 12
    sample_mode = 2 if z_kld is not None else (1 if z_draw is not None else 0)

    args = [hv]
    in_specs = [VMEM_SPEC]
    if vp is not None:
        given_pos, vp_w_hv, vp_w_pos, vp_b = vp
        args += [given_pos, vp_w_hv, vp_w_pos, vp_b]
        in_specs += [VMEM_SPEC] * 4
    if sample_mode == 2:
        args += list(z_kld)      # prior_mu, prior_ls, post_mu, post_ls, eps
        in_specs += [VMEM_SPEC] * 5
    elif sample_mode == 1:
        args += list(z_draw)     # mu, ls, eps
        in_specs += [VMEM_SPEC] * 3
    args += [he, vew1, vew2, p["w_slab"], p["b_slab"], p["ea_w_e"], p["ea_b2"]]
    in_specs += [VMEM_SPEC] * 6 + [SMEM_SPEC]

    out_shapes = [jax.ShapeDtypeStruct((n_vertex, hv_dim), jnp.float32)] * 2
    out_specs = [VMEM_SPEC, VMEM_SPEC]
    if sample_mode == 2:
        out_shapes += [jax.ShapeDtypeStruct((n_vertex, 1), jnp.float32)] * 2
        out_specs += [VMEM_SPEC, VMEM_SPEC]

    kernel = functools.partial(_mpnn_kernel, n_gcn=n_gcn, has_vp=vp is not None,
                               sample_mode=sample_mode)
    return pl.pallas_call(
        kernel,
        out_shape=tuple(out_shapes),
        in_specs=in_specs,
        out_specs=tuple(out_specs),
        compiler_params=pltpu.CompilerParams(vmem_limit_bytes=32 * 1024 * 1024),
        cost_estimate=_mpnn_cost_estimate(n_vertex, n_edge, hv_dim, he.shape[1],
                                          n_gcn, vp is not None, sample_mode),
    )(*args)


# --------------------------- parameter construction ---------------------------

def _rand(key, shape, scale=0.1):
    return scale * jax.random.normal(key, shape, jnp.float32)


def init_mpnn_params(key, hv_dim, he_dim, n_gcn=4):
    H, he = hv_dim, he_dim
    ks = jax.random.split(key, 4)
    n_w = 6 + n_gcn + 6
    n_b = 5 + n_gcn + 6
    return dict(
        w_slab=_rand(ks[0], (n_w, H, H)).astype(jnp.bfloat16),   # all (H,H) weights packed
        b_slab=_rand(ks[1], (n_b, H)),                           # all (1,H) biases packed (f32)
        ea_w_e=_rand(ks[2], (he, H)).astype(jnp.bfloat16),       # edge-feature projection
        ea_b2=_rand(ks[3], (1,)),                                # scalar bias -> SMEM
    )


def init_cvgae_params(key, hv_dim, he_dim):
    ks = jax.random.split(key, 6)
    return dict(
        # vp_linear(H+3 -> H) split along [hv|pos], stored (in, out), bf16.
        vp_w_hv=_rand(ks[0], (hv_dim, hv_dim)).astype(jnp.bfloat16),
        vp_w_pos=_rand(ks[1], (3, hv_dim)).astype(jnp.bfloat16),
        vp_b=_rand(ks[2], (1, hv_dim)),
        prior=init_mpnn_params(ks[3], hv_dim, he_dim),
        post=init_mpnn_params(ks[4], hv_dim, he_dim),
        pred=init_mpnn_params(ks[5], hv_dim, he_dim),
    )


# ------------------------------ forward pass ------------------------------

def cvgae_forward(params, hv_ftr, he_ftr, vew1, vew2, hv_dim,
                  is_training=False, given_pos=None, eps_prior=None, eps_post=None):
    assert (not is_training) or (given_pos is not None)
    # bf16 copies of the MXU-facing operands (one-hot incidence is exact in bf16).
    hv_b = hv_ftr.astype(jnp.bfloat16)
    he_b = he_ftr.astype(jnp.bfloat16)
    v1_b = vew1.astype(jnp.bfloat16)
    v2_b = vew2.astype(jnp.bfloat16)

    prior_mu, prior_ls = naive_mpnn_forward(params["prior"], hv_b, he_b, v1_b, v2_b, hv_dim)
    # TODO(synk): on v7x, run the independent prior/post MPNN passes on the two
    #             TensorCores via a leading "parallel" grid axis / pl.core_map.
    if is_training or given_pos is not None:
        vp = (given_pos, params["vp_w_hv"], params["vp_w_pos"], params["vp_b"])
        post_mu, post_ls = naive_mpnn_forward(params["post"], hv_b, he_b, v1_b, v2_b,
                                              hv_dim, vp=vp)
        if is_training:
            # Fused into the pred kernel: posterior sample + KL(post||prior) + KL(prior||0).
            # (The unused prior sample of the reference training path is dead work: skipped.)
            out_a, out_b, kldz, kld0 = naive_mpnn_forward(
                params["pred"], hv_b, he_b, v1_b, v2_b, hv_dim,
                z_kld=(prior_mu, prior_ls, post_mu, post_ls, eps_post))
            post_x_out = jnp.concatenate([out_a, out_b], axis=1)
            return post_x_out, kldz.reshape(-1), kld0.reshape(-1)
        out_a, out_b = naive_mpnn_forward(
            params["pred"], hv_b, he_b, v1_b, v2_b, hv_dim,
            z_draw=(post_mu, post_ls, eps_post))
        return jnp.concatenate([out_a, out_b], axis=1)
    out_a, out_b = naive_mpnn_forward(
        params["pred"], hv_b, he_b, v1_b, v2_b, hv_dim,
        z_draw=(prior_mu, prior_ls, eps_prior))
    return jnp.concatenate([out_a, out_b], axis=1)


# ----------------------------------- main -----------------------------------

if __name__ == "__main__":
    hv_dim, he_dim = 16, 8
    n_vertex, n_edge = 8, 8

    key = jax.random.PRNGKey(0)
    k_param, k_hv, k_he, k_pos, k_src, k_dst, k_e0, k_e1 = jax.random.split(key, 8)

    params = init_cvgae_params(k_param, hv_dim, he_dim)

    hv_ftr = jax.random.normal(k_hv, (n_vertex, hv_dim), jnp.float32)
    he_ftr = jax.random.normal(k_he, (n_edge, he_dim), jnp.float32)
    given_pos = jax.random.normal(k_pos, (n_vertex, 3), jnp.float32)

    # vertex-edge incidence masks (one-hot per edge endpoint), as in MaskMatrices.
    src = jax.random.randint(k_src, (n_edge,), 0, n_vertex)
    dst = (src + 1 + jax.random.randint(k_dst, (n_edge,), 0, n_vertex - 1)) % n_vertex
    vew1 = jax.nn.one_hot(src, n_vertex, dtype=jnp.float32).T   # (n_vertex, n_edge)
    vew2 = jax.nn.one_hot(dst, n_vertex, dtype=jnp.float32).T

    # reparameterization noise (torch.normal equivalent), supplied from outside kernels.
    eps_prior = jax.random.normal(k_e0, (n_vertex, hv_dim), jnp.float32)
    eps_post = jax.random.normal(k_e1, (n_vertex, hv_dim), jnp.float32)

    # Training path: post_x_out + both KL terms (sample + KLs fused into pred kernel).
    post_x_out, klds_z, klds_0 = cvgae_forward(
        params, hv_ftr, he_ftr, vew1, vew2, hv_dim,
        is_training=True, given_pos=given_pos, eps_post=eps_post)

    # Inference path without given_pos: sample from the prior (fused into pred kernel).
    prior_x_out = cvgae_forward(
        params, hv_ftr, he_ftr, vew1, vew2, hv_dim,
        is_training=False, given_pos=None, eps_prior=eps_prior)

    jax.block_until_ready((post_x_out, klds_z, klds_0, prior_x_out))
    assert post_x_out.shape == (n_vertex, 2 * hv_dim)
    assert prior_x_out.shape == (n_vertex, 2 * hv_dim)
    assert klds_z.shape == (n_vertex,) and klds_0.shape == (n_vertex,)
    assert bool(jnp.all(jnp.isfinite(post_x_out)))
    assert bool(jnp.all(jnp.isfinite(klds_z))) and bool(jnp.all(jnp.isfinite(klds_0)))
    assert bool(jnp.all(jnp.isfinite(prior_x_out)))
    print("KERNEL_OK")
</pallas_src>

<mosaic_0001>
module attributes {stable_mosaic.version = 11 : i64} {
  func.func @_mpnn_kernel(%arg0: memref<8x16xbf16, #tpu.memory_space<vmem>>, %arg1: memref<8x8xbf16, #tpu.memory_space<vmem>>, %arg2: memref<8x8xbf16, #tpu.memory_space<vmem>>, %arg3: memref<8x8xbf16, #tpu.memory_space<vmem>>, %arg4: memref<16x16x16xbf16, #tpu.memory_space<vmem>>, %arg5: memref<15x16xf32, #tpu.memory_space<vmem>>, %arg6: memref<8x16xbf16, #tpu.memory_space<vmem>>, %arg7: memref<1xf32, #tpu.memory_space<smem>>, %arg8: memref<8x16xf32, #tpu.memory_space<vmem>>, %arg9: memref<8x16xf32, #tpu.memory_space<vmem>>) attributes {dimension_semantics = [], scalar_prefetch = 0 : i64, scratch_operands = 0 : i64, tpu.core_type = #tpu.core_type<tc>} {
    %c0 = arith.constant 0 : index
    %c0_0 = arith.constant 0 : index
    %0 = vector.load %arg0[%c0, %c0_0] : memref<8x16xbf16, #tpu.memory_space<vmem>>, vector<8x16xbf16>
    %1 = arith.extf %0 : vector<8x16xbf16> to vector<8x16xf32>
    %c0_1 = arith.constant 0 : index
    %c0_2 = arith.constant 0 : index
    %2 = vector.load %arg1[%c0_1, %c0_2] : memref<8x8xbf16, #tpu.memory_space<vmem>>, vector<8x8xbf16>
    %c0_3 = arith.constant 0 : index
    %c0_4 = arith.constant 0 : index
    %3 = vector.load %arg2[%c0_3, %c0_4] : memref<8x8xbf16, #tpu.memory_space<vmem>>, vector<8x8xbf16>
    %c0_5 = arith.constant 0 : index
    %c0_6 = arith.constant 0 : index
    %4 = vector.load %arg3[%c0_5, %c0_6] : memref<8x8xbf16, #tpu.memory_space<vmem>>, vector<8x8xbf16>
    %c0_7 = arith.constant 0 : index
    %c0_8 = arith.constant 0 : index
    %5 = vector.load %arg5[%c0_7, %c0_8] : memref<15x16xf32, #tpu.memory_space<vmem>>, vector<15x16xf32>
    %c0_9 = arith.constant 0 : index
    %c0_10 = arith.constant 0 : index
    %6 = vector.load %arg6[%c0_9, %c0_10] : memref<8x16xbf16, #tpu.memory_space<vmem>>, vector<8x16xbf16>
    %c0_11 = arith.constant 0 : index
    %7 = memref.load %arg7[%c0_11] : memref<1xf32, #tpu.memory_space<smem>>
    %cst = arith.constant dense<0.000000e+00> : vector<8x16xf32>
    %8 = tpu.matmul %3, %0, %cst {dimension_numbers = #tpu.dot_dimension_numbers<[0], [0], [1], [1], [0, 1, 1, 1], [], []>} : vector<8x8xbf16>, vector<8x16xbf16>, vector<8x16xf32> -> vector<8x16xf32>
    %cst_12 = arith.constant dense<0.000000e+00> : vector<8x16xf32>
    %9 = tpu.matmul %4, %0, %cst_12 {dimension_numbers = #tpu.dot_dimension_numbers<[0], [0], [1], [1], [0, 1, 1, 1], [], []>} : vector<8x8xbf16>, vector<8x16xbf16>, vector<8x16xf32> -> vector<8x16xf32>
    %10 = arith.truncf %8 : vector<8x16xf32> to vector<8x16xbf16>
    %11 = arith.truncf %9 : vector<8x16xf32> to vector<8x16xbf16>
    %c0_13 = arith.constant 0 : index
    %c0_14 = arith.constant 0 : index
    %c0_15 = arith.constant 0 : index
    %12 = vector.load %arg4[%c0_13, %c0_14, %c0_15] : memref<16x16x16xbf16, #tpu.memory_space<vmem>>, vector<1x16x16xbf16>
    %13 = vector.shape_cast %12 : vector<1x16x16xbf16> to vector<16x16xbf16>
    %c1 = arith.constant 1 : index
    %c0_16 = arith.constant 0 : index
    %c0_17 = arith.constant 0 : index
    %14 = vector.load %arg4[%c1, %c0_16, %c0_17] : memref<16x16x16xbf16, #tpu.memory_space<vmem>>, vector<1x16x16xbf16>
    %15 = vector.shape_cast %14 : vector<1x16x16xbf16> to vector<16x16xbf16>
    %cst_18 = arith.constant dense<0.000000e+00> : vector<8x16xf32>
    %16 = tpu.matmul %2, %6, %cst_18 {dimension_numbers = #tpu.dot_dimension_numbers<[1], [0], [0], [1], [0, 0, 1, 1], [], []>} : vector<8x8xbf16>, vector<8x16xbf16>, vector<8x16xf32> -> vector<8x16xf32>
    %cst_19 = arith.constant dense<0.000000e+00> : vector<8x16xf32>
    %17 = tpu.matmul %10, %13, %cst_19 {dimension_numbers = #tpu.dot_dimension_numbers<[1], [0], [0], [1], [0, 0, 1, 1], [], []>} : vector<8x16xbf16>, vector<16x16xbf16>, vector<8x16xf32> -> vector<8x16xf32>
    %cst_20 = arith.constant dense<0.000000e+00> : vector<8x16xf32>
    %18 = tpu.matmul %11, %13, %cst_20 {dimension_numbers = #tpu.dot_dimension_numbers<[1], [0], [0], [1], [0, 0, 1, 1], [], []>} : vector<8x16xbf16>, vector<16x16xbf16>, vector<8x16xf32> -> vector<8x16xf32>
    %cst_21 = arith.constant dense<0.000000e+00> : vector<8x16xf32>
    %19 = tpu.matmul %10, %15, %cst_21 {dimension_numbers = #tpu.dot_dimension_numbers<[1], [0], [0], [1], [0, 0, 1, 1], [], []>} : vector<8x16xbf16>, vector<16x16xbf16>, vector<8x16xf32> -> vector<8x16xf32>
    %cst_22 = arith.constant dense<0.000000e+00> : vector<8x16xf32>
    %20 = tpu.matmul %11, %15, %cst_22 {dimension_numbers = #tpu.dot_dimension_numbers<[1], [0], [0], [1], [0, 0, 1, 1], [], []>} : vector<8x16xbf16>, vector<16x16xbf16>, vector<8x16xf32> -> vector<8x16xf32>
    %21 = vector.extract_strided_slice %5 {offsets = [0, 0], sizes = [1, 16], strides = [1, 1]} : vector<15x16xf32> to vector<1x16xf32>
    %22 = arith.addf %17, %16 : vector<8x16xf32>
    %23 = arith.addf %22, %20 : vector<8x16xf32>
    %24 = vector.broadcast %21 : vector<1x16xf32> to vector<8x16xf32>
    %25 = arith.addf %23, %24 : vector<8x16xf32>
    %cst_23 = arith.constant 0.000000e+00 : f32
    %26 = vector.broadcast %cst_23 : f32 to vector<8x16xf32>
    %27 = arith.maximumf %25, %26 : vector<8x16xf32>
    %28 = arith.addf %18, %16 : vector<8x16xf32>
    %29 = arith.addf %28, %19 : vector<8x16xf32>
    %30 = vector.broadcast %21 : vector<1x16xf32> to vector<8x16xf32>
    %31 = arith.addf %29, %30 : vector<8x16xf32>
    %cst_24 = arith.constant 0.000000e+00 : f32
    %32 = vector.broadcast %cst_24 : f32 to vector<8x16xf32>
    %33 = arith.maximumf %31, %32 : vector<8x16xf32>
    %34 = vector.extract_strided_slice %5 {offsets = [1, 0], sizes = [1, 16], strides = [1, 1]} : vector<15x16xf32> to vector<1x16xf32>
    %35 = arith.truncf %34 : vector<1x16xf32> to vector<1x16xbf16>
    %36 = arith.truncf %27 : vector<8x16xf32> to vector<8x16xbf16>
    %cst_25 = arith.constant dense<0.000000e+00> : vector<1x8xf32>
    %37 = tpu.matmul %35, %36, %cst_25 {dimension_numbers = #tpu.dot_dimension_numbers<[1], [1], [0], [0], [0, 0, 1, 0], [], []>} : vector<1x16xbf16>, vector<8x16xbf16>, vector<1x8xf32> -> vector<1x8xf32>
    %38 = vector.broadcast %7 : f32 to vector<1x8xf32>
    %39 = arith.addf %37, %38 : vector<1x8xf32>
    %40 = arith.negf %39 : vector<1x8xf32>
    %41 = math.exp %40 : vector<1x8xf32>
    %cst_26 = arith.constant 1.000000e+00 : f32
    %42 = vector.broadcast %cst_26 : f32 to vector<1x8xf32>
    %43 = arith.addf %42, %41 : vector<1x8xf32>
    %44 = arith.divf %42, %43 : vector<1x8xf32>
    %45 = arith.truncf %33 : vector<8x16xf32> to vector<8x16xbf16>
    %cst_27 = arith.constant dense<0.000000e+00> : vector<1x8xf32>
    %46 = tpu.matmul %35, %45, %cst_27 {dimension_numbers = #tpu.dot_dimension_numbers<[1], [1], [0], [0], [0, 0, 1, 0], [], []>} : vector<1x16xbf16>, vector<8x16xbf16>, vector<1x8xf32> -> vector<1x8xf32>
    %47 = vector.broadcast %7 : f32 to vector<1x8xf32>
    %48 = arith.addf %46, %47 : vector<1x8xf32>
    %49 = arith.negf %48 : vector<1x8xf32>
    %50 = math.exp %49 : vector<1x8xf32>
    %cst_28 = arith.constant 1.000000e+00 : f32
    %51 = vector.broadcast %cst_28 : f32 to vector<1x8xf32>
    %52 = arith.addf %51, %50 : vector<1x8xf32>
    %53 = arith.divf %51, %52 : vector<1x8xf32>
    %54 = arith.truncf %44 : vector<1x8xf32> to vector<1x8xbf16>
    %55 = vector.broadcast %54 : vector<1x8xbf16> to vector<8x8xbf16>
    %56 = arith.mulf %3, %55 : vector<8x8xbf16>
    %cst_29 = arith.constant dense<0.000000e+00> : vector<8x8xf32>
    %57 = tpu.matmul %56, %4, %cst_29 {dimension_numbers = #tpu.dot_dimension_numbers<[1], [1], [0], [0], [0, 0, 1, 0], [], []>} : vector<8x8xbf16>, vector<8x8xbf16>, vector<8x8xf32> -> vector<8x8xf32>
    %58 = arith.truncf %53 : vector<1x8xf32> to vector<1x8xbf16>
    %59 = vector.broadcast %58 : vector<1x8xbf16> to vector<8x8xbf16>
    %60 = arith.mulf %4, %59 : vector<8x8xbf16>
    %cst_30 = arith.constant dense<0.000000e+00> : vector<8x8xf32>
    %61 = tpu.matmul %60, %3, %cst_30 {dimension_numbers = #tpu.dot_dimension_numbers<[1], [1], [0], [0], [0, 0, 1, 0], [], []>} : vector<8x8xbf16>, vector<8x8xbf16>, vector<8x8xf32> -> vector<8x8xf32>
    %62 = arith.addf %57, %61 : vector<8x8xf32>
    %cst_31 = arith.constant dense<0.000000e+00> : vector<8xf32>
    %63 = vector.multi_reduction <add>, %62, %cst_31 [1] : vector<8x8xf32> to vector<8xf32>
    %64 = vector.shape_cast %63 : vector<8xf32> to vector<8x1xf32>
    %cst_32 = arith.constant dense<0.000000e+00> : vector<8xf32>
    %65 = vector.multi_reduction <add>, %62, %cst_32 [0] : vector<8x8xf32> to vector<8xf32>
    %66 = vector.shape_cast %65 : vector<8xf32> to vector<1x8xf32>
    %67 = math.sqrt %64 : vector<8x1xf32>
    %cst_33 = arith.constant 9.99999997E-7 : f32
    %68 = vector.broadcast %cst_33 : f32 to vector<8x1xf32>
    %69 = arith.addf %67, %68 : vector<8x1xf32>
    %70 = tpu.reciprocal %69 {approx = true} : vector<8x1xf32> -> vector<8x1xf32>
    %71 = math.sqrt %66 : vector<1x8xf32>
    %cst_34 = arith.constant 9.99999997E-7 : f32
    %72 = vector.broadcast %cst_34 : f32 to vector<1x8xf32>
    %73 = arith.addf %71, %72 : vector<1x8xf32>
    %74 = tpu.reciprocal %73 {approx = true} : vector<1x8xf32> -> vector<1x8xf32>
    %75 = vector.broadcast %70 : vector<8x1xf32> to vector<8x8xf32>
    %76 = arith.mulf %62, %75 : vector<8x8xf32>
    %77 = vector.broadcast %74 : vector<1x8xf32> to vector<8x8xf32>
    %78 = arith.mulf %76, %77 : vector<8x8xf32>
    %79 = arith.truncf %78 : vector<8x8xf32> to vector<8x8xbf16>
    %c10 = arith.constant 10 : index
    %c0_35 = arith.constant 0 : index
    %c0_36 = arith.constant 0 : index
    %80 = vector.load %arg4[%c10, %c0_35, %c0_36] : memref<16x16x16xbf16, #tpu.memory_space<vmem>>, vector<1x16x16xbf16>
    %81 = vector.shape_cast %80 : vector<1x16x16xbf16> to vector<16x16xbf16>
    %c11 = arith.constant 11 : index
    %c0_37 = arith.constant 0 : index
    %c0_38 = arith.constant 0 : index
    %82 = vector.load %arg4[%c11, %c0_37, %c0_38] : memref<16x16x16xbf16, #tpu.memory_space<vmem>>, vector<1x16x16xbf16>
    %83 = vector.shape_cast %82 : vector<1x16x16xbf16> to vector<16x16xbf16>
    %c12 = arith.constant 12 : index
    %c0_39 = arith.constant 0 : index
    %c0_40 = arith.constant 0 : index
    %84 = vector.load %arg4[%c12, %c0_39, %c0_40] : memref<16x16x16xbf16, #tpu.memory_space<vmem>>, vector<1x16x16xbf16>
    %85 = vector.shape_cast %84 : vector<1x16x16xbf16> to vector<16x16xbf16>
    %c13 = arith.constant 13 : index
    %c0_41 = arith.constant 0 : index
    %c0_42 = arith.constant 0 : index
    %86 = vector.load %arg4[%c13, %c0_41, %c0_42] : memref<16x16x16xbf16, #tpu.memory_space<vmem>>, vector<1x16x16xbf16>
    %87 = vector.shape_cast %86 : vector<1x16x16xbf16> to vector<16x16xbf16>
    %c14 = arith.constant 14 : index
    %c0_43 = arith.constant 0 : index
    %c0_44 = arith.constant 0 : index
    %88 = vector.load %arg4[%c14, %c0_43, %c0_44] : memref<16x16x16xbf16, #tpu.memory_space<vmem>>, vector<1x16x16xbf16>
    %89 = vector.shape_cast %88 : vector<1x16x16xbf16> to vector<16x16xbf16>
    %c15 = arith.constant 15 : index
    %c0_45 = arith.constant 0 : index
    %c0_46 = arith.constant 0 : index
    %90 = vector.load %arg4[%c15, %c0_45, %c0_46] : memref<16x16x16xbf16, #tpu.memory_space<vmem>>, vector<1x16x16xbf16>
    %91 = vector.shape_cast %90 : vector<1x16x16xbf16> to vector<16x16xbf16>
    %92 = vector.extract_strided_slice %5 {offsets = [9, 0], sizes = [1, 16], strides = [1, 1]} : vector<15x16xf32> to vector<1x16xf32>
    %93 = vector.extract_strided_slice %5 {offsets = [10, 0], sizes = [1, 16], strides = [1, 1]} : vector<15x16xf32> to vector<1x16xf32>
    %94 = vector.extract_strided_slice %5 {offsets = [11, 0], sizes = [1, 16], strides = [1, 1]} : vector<15x16xf32> to vector<1x16xf32>
    %95 = vector.extract_strided_slice %5 {offsets = [12, 0], sizes = [1, 16], strides = [1, 1]} : vector<15x16xf32> to vector<1x16xf32>
    %96 = vector.extract_strided_slice %5 {offsets = [13, 0], sizes = [1, 16], strides = [1, 1]} : vector<15x16xf32> to vector<1x16xf32>
    %97 = vector.extract_strided_slice %5 {offsets = [14, 0], sizes = [1, 16], strides = [1, 1]} : vector<15x16xf32> to vector<1x16xf32>
    %98 = arith.truncf %1 : vector<8x16xf32> to vector<8x16xbf16>
    %c6 = arith.constant 6 : index
    %c0_47 = arith.constant 0 : index
    %c0_48 = arith.constant 0 : index
    %99 = vector.load %arg4[%c6, %c0_47, %c0_48] : memref<16x16x16xbf16, #tpu.memory_space<vmem>>, vector<1x16x16xbf16>
    %100 = vector.shape_cast %99 : vector<1x16x16xbf16> to vector<16x16xbf16>
    %cst_49 = arith.constant dense<0.000000e+00> : vector<8x16xf32>
    %101 = tpu.matmul %98, %100, %cst_49 {dimension_numbers = #tpu.dot_dimension_numbers<[1], [0], [0], [1], [0, 0, 1, 1], [], []>} : vector<8x16xbf16>, vector<16x16xbf16>, vector<8x16xf32> -> vector<8x16xf32>
    %102 = arith.truncf %101 : vector<8x16xf32> to vector<8x16xbf16>
    %cst_50 = arith.constant dense<0.000000e+00> : vector<8x16xf32>
    %103 = tpu.matmul %79, %102, %cst_50 {dimension_numbers = #tpu.dot_dimension_numbers<[1], [0], [0], [1], [0, 0, 1, 1], [], []>} : vector<8x8xbf16>, vector<8x16xbf16>, vector<8x16xf32> -> vector<8x16xf32>
    %104 = vector.extract_strided_slice %5 {offsets = [5, 0], sizes = [1, 16], strides = [1, 1]} : vector<15x16xf32> to vector<1x16xf32>
    %105 = vector.broadcast %104 : vector<1x16xf32> to vector<8x16xf32>
    %106 = arith.addf %103, %105 : vector<8x16xf32>
    %cst_51 = arith.constant 0.000000e+00 : f32
    %107 = vector.broadcast %cst_51 : f32 to vector<8x16xf32>
    %108 = arith.maximumf %106, %107 : vector<8x16xf32>
    %109 = arith.truncf %108 : vector<8x16xf32> to vector<8x16xbf16>
    %cst_52 = arith.constant dense<0.000000e+00> : vector<8x16xf32>
    %110 = tpu.matmul %109, %81, %cst_52 {dimension_numbers = #tpu.dot_dimension_numbers<[1], [0], [0], [1], [0, 0, 1, 1], [], []>} : vector<8x16xbf16>, vector<16x16xbf16>, vector<8x16xf32> -> vector<8x16xf32>
    %111 = vector.broadcast %92 : vector<1x16xf32> to vector<8x16xf32>
    %112 = arith.addf %110, %111 : vector<8x16xf32>
    %cst_53 = arith.constant dense<0.000000e+00> : vector<8x16xf32>
    %113 = tpu.matmul %98, %87, %cst_53 {dimension_numbers = #tpu.dot_dimension_numbers<[1], [0], [0], [1], [0, 0, 1, 1], [], []>} : vector<8x16xbf16>, vector<16x16xbf16>, vector<8x16xf32> -> vector<8x16xf32>
    %114 = arith.addf %112, %113 : vector<8x16xf32>
    %115 = vector.broadcast %95 : vector<1x16xf32> to vector<8x16xf32>
    %116 = arith.addf %114, %115 : vector<8x16xf32>
    %117 = arith.negf %116 : vector<8x16xf32>
    %118 = math.exp %117 : vector<8x16xf32>
    %cst_54 = arith.constant 1.000000e+00 : f32
    %119 = vector.broadcast %cst_54 : f32 to vector<8x16xf32>
    %120 = arith.addf %119, %118 : vector<8x16xf32>
    %121 = arith.divf %119, %120 : vector<8x16xf32>
    %cst_55 = arith.constant dense<0.000000e+00> : vector<8x16xf32>
    %122 = tpu.matmul %109, %83, %cst_55 {dimension_numbers = #tpu.dot_dimension_numbers<[1], [0], [0], [1], [0, 0, 1, 1], [], []>} : vector<8x16xbf16>, vector<16x16xbf16>, vector<8x16xf32> -> vector<8x16xf32>
    %123 = vector.broadcast %93 : vector<1x16xf32> to vector<8x16xf32>
    %124 = arith.addf %122, %123 : vector<8x16xf32>
    %cst_56 = arith.constant dense<0.000000e+00> : vector<8x16xf32>
    %125 = tpu.matmul %98, %89, %cst_56 {dimension_numbers = #tpu.dot_dimension_numbers<[1], [0], [0], [1], [0, 0, 1, 1], [], []>} : vector<8x16xbf16>, vector<16x16xbf16>, vector<8x16xf32> -> vector<8x16xf32>
    %126 = arith.addf %124, %125 : vector<8x16xf32>
    %127 = vector.broadcast %96 : vector<1x16xf32> to vector<8x16xf32>
    %128 = arith.addf %126, %127 : vector<8x16xf32>
    %129 = arith.negf %128 : vector<8x16xf32>
    %130 = math.exp %129 : vector<8x16xf32>
    %cst_57 = arith.constant 1.000000e+00 : f32
    %131 = vector.broadcast %cst_57 : f32 to vector<8x16xf32>
    %132 = arith.addf %131, %130 : vector<8x16xf32>
    %133 = arith.divf %131, %132 : vector<8x16xf32>
    %cst_58 = arith.constant dense<0.000000e+00> : vector<8x16xf32>
    %134 = tpu.matmul %109, %85, %cst_58 {dimension_numbers = #tpu.dot_dimension_numbers<[1], [0], [0], [1], [0, 0, 1, 1], [], []>} : vector<8x16xbf16>, vector<16x16xbf16>, vector<8x16xf32> -> vector<8x16xf32>
    %135 = vector.broadcast %94 : vector<1x16xf32> to vector<8x16xf32>
    %136 = arith.addf %134, %135 : vector<8x16xf32>
    %cst_59 = arith.constant dense<0.000000e+00> : vector<8x16xf32>
    %137 = tpu.matmul %98, %91, %cst_59 {dimension_numbers = #tpu.dot_dimension_numbers<[1], [0], [0], [1], [0, 0, 1, 1], [], []>} : vector<8x16xbf16>, vector<16x16xbf16>, vector<8x16xf32> -> vector<8x16xf32>
    %138 = vector.broadcast %97 : vector<1x16xf32> to vector<8x16xf32>
    %139 = arith.addf %137, %138 : vector<8x16xf32>
    %140 = arith.mulf %121, %139 : vector<8x16xf32>
    %141 = arith.addf %136, %140 : vector<8x16xf32>
    %142 = math.tanh %141 : vector<8x16xf32>
    %cst_60 = arith.constant 1.000000e+00 : f32
    %143 = vector.broadcast %cst_60 : f32 to vector<8x16xf32>
    %144 = arith.subf %143, %133 : vector<8x16xf32>
    %145 = arith.mulf %144, %142 : vector<8x16xf32>
    %146 = arith.mulf %133, %1 : vector<8x16xf32>
    %147 = arith.addf %145, %146 : vector<8x16xf32>
    %148 = arith.truncf %147 : vector<8x16xf32> to vector<8x16xbf16>
    %c7 = arith.constant 7 : index
    %c0_61 = arith.constant 0 : index
    %c0_62 = arith.constant 0 : index
    %149 = vector.load %arg4[%c7, %c0_61, %c0_62] : memref<16x16x16xbf16, #tpu.memory_space<vmem>>, vector<1x16x16xbf16>
    %150 = vector.shape_cast %149 : vector<1x16x16xbf16> to vector<16x16xbf16>
    %cst_63 = arith.constant dense<0.000000e+00> : vector<8x16xf32>
    %151 = tpu.matmul %148, %150, %cst_63 {dimension_numbers = #tpu.dot_dimension_numbers<[1], [0], [0], [1], [0, 0, 1, 1], [], []>} : vector<8x16xbf16>, vector<16x16xbf16>, vector<8x16xf32> -> vector<8x16xf32>
    %152 = arith.truncf %151 : vector<8x16xf32> to vector<8x16xbf16>
    %cst_64 = arith.constant dense<0.000000e+00> : vector<8x16xf32>
    %153 = tpu.matmul %79, %152, %cst_64 {dimension_numbers = #tpu.dot_dimension_numbers<[1], [0], [0], [1], [0, 0, 1, 1], [], []>} : vector<8x8xbf16>, vector<8x16xbf16>, vector<8x16xf32> -> vector<8x16xf32>
    %154 = vector.extract_strided_slice %5 {offsets = [6, 0], sizes = [1, 16], strides = [1, 1]} : vector<15x16xf32> to vector<1x16xf32>
    %155 = vector.broadcast %154 : vector<1x16xf32> to vector<8x16xf32>
    %156 = arith.addf %153, %155 : vector<8x16xf32>
    %cst_65 = arith.constant 0.000000e+00 : f32
    %157 = vector.broadcast %cst_65 : f32 to vector<8x16xf32>
    %158 = arith.maximumf %156, %157 : vector<8x16xf32>
    %159 = arith.truncf %158 : vector<8x16xf32> to vector<8x16xbf16>
    %cst_66 = arith.constant dense<0.000000e+00> : vector<8x16xf32>
    %160 = tpu.matmul %159, %81, %cst_66 {dimension_numbers = #tpu.dot_dimension_numbers<[1], [0], [0], [1], [0, 0, 1, 1], [], []>} : vector<8x16xbf16>, vector<16x16xbf16>, vector<8x16xf32> -> vector<8x16xf32>
    %161 = vector.broadcast %92 : vector<1x16xf32> to vector<8x16xf32>
    %162 = arith.addf %160, %161 : vector<8x16xf32>
    %cst_67 = arith.constant dense<0.000000e+00> : vector<8x16xf32>
    %163 = tpu.matmul %148, %87, %cst_67 {dimension_numbers = #tpu.dot_dimension_numbers<[1], [0], [0], [1], [0, 0, 1, 1], [], []>} : vector<8x16xbf16>, vector<16x16xbf16>, vector<8x16xf32> -> vector<8x16xf32>
    %164 = arith.addf %162, %163 : vector<8x16xf32>
    %165 = vector.broadcast %95 : vector<1x16xf32> to vector<8x16xf32>
    %166 = arith.addf %164, %165 : vector<8x16xf32>
    %167 = arith.negf %166 : vector<8x16xf32>
    %168 = math.exp %167 : vector<8x16xf32>
    %cst_68 = arith.constant 1.000000e+00 : f32
    %169 = vector.broadcast %cst_68 : f32 to vector<8x16xf32>
    %170 = arith.addf %169, %168 : vector<8x16xf32>
    %171 = arith.divf %169, %170 : vector<8x16xf32>
    %cst_69 = arith.constant dense<0.000000e+00> : vector<8x16xf32>
    %172 = tpu.matmul %159, %83, %cst_69 {dimension_numbers = #tpu.dot_dimension_numbers<[1], [0], [0], [1], [0, 0, 1, 1], [], []>} : vector<8x16xbf16>, vector<16x16xbf16>, vector<8x16xf32> -> vector<8x16xf32>
    %173 = vector.broadcast %93 : vector<1x16xf32> to vector<8x16xf32>
    %174 = arith.addf %172, %173 : vector<8x16xf32>
    %cst_70 = arith.constant dense<0.000000e+00> : vector<8x16xf32>
    %175 = tpu.matmul %148, %89, %cst_70 {dimension_numbers = #tpu.dot_dimension_numbers<[1], [0], [0], [1], [0, 0, 1, 1], [], []>} : vector<8x16xbf16>, vector<16x16xbf16>, vector<8x16xf32> -> vector<8x16xf32>
    %176 = arith.addf %174, %175 : vector<8x16xf32>
    %177 = vector.broadcast %96 : vector<1x16xf32> to vector<8x16xf32>
    %178 = arith.addf %176, %177 : vector<8x16xf32>
    %179 = arith.negf %178 : vector<8x16xf32>
    %180 = math.exp %179 : vector<8x16xf32>
    %cst_71 = arith.constant 1.000000e+00 : f32
    %181 = vector.broadcast %cst_71 : f32 to vector<8x16xf32>
    %182 = arith.addf %181, %180 : vector<8x16xf32>
    %183 = arith.divf %181, %182 : vector<8x16xf32>
    %cst_72 = arith.constant dense<0.000000e+00> : vector<8x16xf32>
    %184 = tpu.matmul %159, %85, %cst_72 {dimension_numbers = #tpu.dot_dimension_numbers<[1], [0], [0], [1], [0, 0, 1, 1], [], []>} : vector<8x16xbf16>, vector<16x16xbf16>, vector<8x16xf32> -> vector<8x16xf32>
    %185 = vector.broadcast %94 : vector<1x16xf32> to vector<8x16xf32>
    %186 = arith.addf %184, %185 : vector<8x16xf32>
    %cst_73 = arith.constant dense<0.000000e+00> : vector<8x16xf32>
    %187 = tpu.matmul %148, %91, %cst_73 {dimension_numbers = #tpu.dot_dimension_numbers<[1], [0], [0], [1], [0, 0, 1, 1], [], []>} : vector<8x16xbf16>, vector<16x16xbf16>, vector<8x16xf32> -> vector<8x16xf32>
    %188 = vector.broadcast %97 : vector<1x16xf32> to vector<8x16xf32>
    %189 = arith.addf %187, %188 : vector<8x16xf32>
    %190 = arith.mulf %171, %189 : vector<8x16xf32>
    %191 = arith.addf %186, %190 : vector<8x16xf32>
    %192 = math.tanh %191 : vector<8x16xf32>
    %cst_74 = arith.constant 1.000000e+00 : f32
    %193 = vector.broadcast %cst_74 : f32 to vector<8x16xf32>
    %194 = arith.subf %193, %183 : vector<8x16xf32>
    %195 = arith.mulf %194, %192 : vector<8x16xf32>
    %196 = arith.mulf %183, %147 : vector<8x16xf32>
    %197 = arith.addf %195, %196 : vector<8x16xf32>
    %198 = arith.truncf %197 : vector<8x16xf32> to vector<8x16xbf16>
    %c8 = arith.constant 8 : index
    %c0_75 = arith.constant 0 : index
    %c0_76 = arith.constant 0 : index
    %199 = vector.load %arg4[%c8, %c0_75, %c0_76] : memref<16x16x16xbf16, #tpu.memory_space<vmem>>, vector<1x16x16xbf16>
    %200 = vector.shape_cast %199 : vector<1x16x16xbf16> to vector<16x16xbf16>
    %cst_77 = arith.constant dense<0.000000e+00> : vector<8x16xf32>
    %201 = tpu.matmul %198, %200, %cst_77 {dimension_numbers = #tpu.dot_dimension_numbers<[1], [0], [0], [1], [0, 0, 1, 1], [], []>} : vector<8x16xbf16>, vector<16x16xbf16>, vector<8x16xf32> -> vector<8x16xf32>
    %202 = arith.truncf %201 : vector<8x16xf32> to vector<8x16xbf16>
    %cst_78 = arith.constant dense<0.000000e+00> : vector<8x16xf32>
    %203 = tpu.matmul %79, %202, %cst_78 {dimension_numbers = #tpu.dot_dimension_numbers<[1], [0], [0], [1], [0, 0, 1, 1], [], []>} : vector<8x8xbf16>, vector<8x16xbf16>, vector<8x16xf32> -> vector<8x16xf32>
    %204 = vector.extract_strided_slice %5 {offsets = [7, 0], sizes = [1, 16], strides = [1, 1]} : vector<15x16xf32> to vector<1x16xf32>
    %205 = vector.broadcast %204 : vector<1x16xf32> to vector<8x16xf32>
    %206 = arith.addf %203, %205 : vector<8x16xf32>
    %cst_79 = arith.constant 0.000000e+00 : f32
    %207 = vector.broadcast %cst_79 : f32 to vector<8x16xf32>
    %208 = arith.maximumf %206, %207 : vector<8x16xf32>
    %209 = arith.truncf %208 : vector<8x16xf32> to vector<8x16xbf16>
    %cst_80 = arith.constant dense<0.000000e+00> : vector<8x16xf32>
    %210 = tpu.matmul %209, %81, %cst_80 {dimension_numbers = #tpu.dot_dimension_numbers<[1], [0], [0], [1], [0, 0, 1, 1], [], []>} : vector<8x16xbf16>, vector<16x16xbf16>, vector<8x16xf32> -> vector<8x16xf32>
    %211 = vector.broadcast %92 : vector<1x16xf32> to vector<8x16xf32>
    %212 = arith.addf %210, %211 : vector<8x16xf32>
    %cst_81 = arith.constant dense<0.000000e+00> : vector<8x16xf32>
    %213 = tpu.matmul %198, %87, %cst_81 {dimension_numbers = #tpu.dot_dimension_numbers<[1], [0], [0], [1], [0, 0, 1, 1], [], []>} : vector<8x16xbf16>, vector<16x16xbf16>, vector<8x16xf32> -> vector<8x16xf32>
    %214 = arith.addf %212, %213 : vector<8x16xf32>
    %215 = vector.broadcast %95 : vector<1x16xf32> to vector<8x16xf32>
    %216 = arith.addf %214, %215 : vector<8x16xf32>
    %217 = arith.negf %216 : vector<8x16xf32>
    %218 = math.exp %217 : vector<8x16xf32>
    %cst_82 = arith.constant 1.000000e+00 : f32
    %219 = vector.broadcast %cst_82 : f32 to vector<8x16xf32>
    %220 = arith.addf %219, %218 : vector<8x16xf32>
    %221 = arith.divf %219, %220 : vector<8x16xf32>
    %cst_83 = arith.constant dense<0.000000e+00> : vector<8x16xf32>
    %222 = tpu.matmul %209, %83, %cst_83 {dimension_numbers = #tpu.dot_dimension_numbers<[1], [0], [0], [1], [0, 0, 1, 1], [], []>} : vector<8x16xbf16>, vector<16x16xbf16>, vector<8x16xf32> -> vector<8x16xf32>
    %223 = vector.broadcast %93 : vector<1x16xf32> to vector<8x16xf32>
    %224 = arith.addf %222, %223 : vector<8x16xf32>
    %cst_84 = arith.constant dense<0.000000e+00> : vector<8x16xf32>
    %225 = tpu.matmul %198, %89, %cst_84 {dimension_numbers = #tpu.dot_dimension_numbers<[1], [0], [0], [1], [0, 0, 1, 1], [], []>} : vector<8x16xbf16>, vector<16x16xbf16>, vector<8x16xf32> -> vector<8x16xf32>
    %226 = arith.addf %224, %225 : vector<8x16xf32>
    %227 = vector.broadcast %96 : vector<1x16xf32> to vector<8x16xf32>
    %228 = arith.addf %226, %227 : vector<8x16xf32>
    %229 = arith.negf %228 : vector<8x16xf32>
    %230 = math.exp %229 : vector<8x16xf32>
    %cst_85 = arith.constant 1.000000e+00 : f32
    %231 = vector.broadcast %cst_85 : f32 to vector<8x16xf32>
    %232 = arith.addf %231, %230 : vector<8x16xf32>
    %233 = arith.divf %231, %232 : vector<8x16xf32>
    %cst_86 = arith.constant dense<0.000000e+00> : vector<8x16xf32>
    %234 = tpu.matmul %209, %85, %cst_86 {dimension_numbers = #tpu.dot_dimension_numbers<[1], [0], [0], [1], [0, 0, 1, 1], [], []>} : vector<8x16xbf16>, vector<16x16xbf16>, vector<8x16xf32> -> vector<8x16xf32>
    %235 = vector.broadcast %94 : vector<1x16xf32> to vector<8x16xf32>
    %236 = arith.addf %234, %235 : vector<8x16xf32>
    %cst_87 = arith.constant dense<0.000000e+00> : vector<8x16xf32>
    %237 = tpu.matmul %198, %91, %cst_87 {dimension_numbers = #tpu.dot_dimension_numbers<[1], [0], [0], [1], [0, 0, 1, 1], [], []>} : vector<8x16xbf16>, vector<16x16xbf16>, vector<8x16xf32> -> vector<8x16xf32>
    %238 = vector.broadcast %97 : vector<1x16xf32> to vector<8x16xf32>
    %239 = arith.addf %237, %238 : vector<8x16xf32>
    %240 = arith.mulf %221, %239 : vector<8x16xf32>
    %241 = arith.addf %236, %240 : vector<8x16xf32>
    %242 = math.tanh %241 : vector<8x16xf32>
    %cst_88 = arith.constant 1.000000e+00 : f32
    %243 = vector.broadcast %cst_88 : f32 to vector<8x16xf32>
    %244 = arith.subf %243, %233 : vector<8x16xf32>
    %245 = arith.mulf %244, %242 : vector<8x16xf32>
    %246 = arith.mulf %233, %197 : vector<8x16xf32>
    %247 = arith.addf %245, %246 : vector<8x16xf32>
    %248 = arith.truncf %247 : vector<8x16xf32> to vector<8x16xbf16>
    %c9 = arith.constant 9 : index
    %c0_89 = arith.constant 0 : index
    %c0_90 = arith.constant 0 : index
    %249 = vector.load %arg4[%c9, %c0_89, %c0_90] : memref<16x16x16xbf16, #tpu.memory_space<vmem>>, vector<1x16x16xbf16>
    %250 = vector.shape_cast %249 : vector<1x16x16xbf16> to vector<16x16xbf16>
    %cst_91 = arith.constant dense<0.000000e+00> : vector<8x16xf32>
    %251 = tpu.matmul %248, %250, %cst_91 {dimension_numbers = #tpu.dot_dimension_numbers<[1], [0], [0], [1], [0, 0, 1, 1], [], []>} : vector<8x16xbf16>, vector<16x16xbf16>, vector<8x16xf32> -> vector<8x16xf32>
    %252 = arith.truncf %251 : vector<8x16xf32> to vector<8x16xbf16>
    %cst_92 = arith.constant dense<0.000000e+00> : vector<8x16xf32>
    %253 = tpu.matmul %79, %252, %cst_92 {dimension_numbers = #tpu.dot_dimension_numbers<[1], [0], [0], [1], [0, 0, 1, 1], [], []>} : vector<8x8xbf16>, vector<8x16xbf16>, vector<8x16xf32> -> vector<8x16xf32>
    %254 = vector.extract_strided_slice %5 {offsets = [8, 0], sizes = [1, 16], strides = [1, 1]} : vector<15x16xf32> to vector<1x16xf32>
    %255 = vector.broadcast %254 : vector<1x16xf32> to vector<8x16xf32>
    %256 = arith.addf %253, %255 : vector<8x16xf32>
    %cst_93 = arith.constant 0.000000e+00 : f32
    %257 = vector.broadcast %cst_93 : f32 to vector<8x16xf32>
    %258 = arith.maximumf %256, %257 : vector<8x16xf32>
    %259 = arith.truncf %258 : vector<8x16xf32> to vector<8x16xbf16>
    %cst_94 = arith.constant dense<0.000000e+00> : vector<8x16xf32>
    %260 = tpu.matmul %259, %81, %cst_94 {dimension_numbers = #tpu.dot_dimension_numbers<[1], [0], [0], [1], [0, 0, 1, 1], [], []>} : vector<8x16xbf16>, vector<16x16xbf16>, vector<8x16xf32> -> vector<8x16xf32>
    %261 = vector.broadcast %92 : vector<1x16xf32> to vector<8x16xf32>
    %262 = arith.addf %260, %261 : vector<8x16xf32>
    %cst_95 = arith.constant dense<0.000000e+00> : vector<8x16xf32>
    %263 = tpu.matmul %248, %87, %cst_95 {dimension_numbers = #tpu.dot_dimension_numbers<[1], [0], [0], [1], [0, 0, 1, 1], [], []>} : vector<8x16xbf16>, vector<16x16xbf16>, vector<8x16xf32> -> vector<8x16xf32>
    %264 = arith.addf %262, %263 : vector<8x16xf32>
    %265 = vector.broadcast %95 : vector<1x16xf32> to vector<8x16xf32>
    %266 = arith.addf %264, %265 : vector<8x16xf32>
    %267 = arith.negf %266 : vector<8x16xf32>
    %268 = math.exp %267 : vector<8x16xf32>
    %cst_96 = arith.constant 1.000000e+00 : f32
    %269 = vector.broadcast %cst_96 : f32 to vector<8x16xf32>
    %270 = arith.addf %269, %268 : vector<8x16xf32>
    %271 = arith.divf %269, %270 : vector<8x16xf32>
    %cst_97 = arith.constant dense<0.000000e+00> : vector<8x16xf32>
    %272 = tpu.matmul %259, %83, %cst_97 {dimension_numbers = #tpu.dot_dimension_numbers<[1], [0], [0], [1], [0, 0, 1, 1], [], []>} : vector<8x16xbf16>, vector<16x16xbf16>, vector<8x16xf32> -> vector<8x16xf32>
    %273 = vector.broadcast %93 : vector<1x16xf32> to vector<8x16xf32>
    %274 = arith.addf %272, %273 : vector<8x16xf32>
    %cst_98 = arith.constant dense<0.000000e+00> : vector<8x16xf32>
    %275 = tpu.matmul %248, %89, %cst_98 {dimension_numbers = #tpu.dot_dimension_numbers<[1], [0], [0], [1], [0, 0, 1, 1], [], []>} : vector<8x16xbf16>, vector<16x16xbf16>, vector<8x16xf32> -> vector<8x16xf32>
    %276 = arith.addf %274, %275 : vector<8x16xf32>
    %277 = vector.broadcast %96 : vector<1x16xf32> to vector<8x16xf32>
    %278 = arith.addf %276, %277 : vector<8x16xf32>
    %279 = arith.negf %278 : vector<8x16xf32>
    %280 = math.exp %279 : vector<8x16xf32>
    %cst_99 = arith.constant 1.000000e+00 : f32
    %281 = vector.broadcast %cst_99 : f32 to vector<8x16xf32>
    %282 = arith.addf %281, %280 : vector<8x16xf32>
    %283 = arith.divf %281, %282 : vector<8x16xf32>
    %cst_100 = arith.constant dense<0.000000e+00> : vector<8x16xf32>
    %284 = tpu.matmul %259, %85, %cst_100 {dimension_numbers = #tpu.dot_dimension_numbers<[1], [0], [0], [1], [0, 0, 1, 1], [], []>} : vector<8x16xbf16>, vector<16x16xbf16>, vector<8x16xf32> -> vector<8x16xf32>
    %285 = vector.broadcast %94 : vector<1x16xf32> to vector<8x16xf32>
    %286 = arith.addf %284, %285 : vector<8x16xf32>
    %cst_101 = arith.constant dense<0.000000e+00> : vector<8x16xf32>
    %287 = tpu.matmul %248, %91, %cst_101 {dimension_numbers = #tpu.dot_dimension_numbers<[1], [0], [0], [1], [0, 0, 1, 1], [], []>} : vector<8x16xbf16>, vector<16x16xbf16>, vector<8x16xf32> -> vector<8x16xf32>
    %288 = vector.broadcast %97 : vector<1x16xf32> to vector<8x16xf32>
    %289 = arith.addf %287, %288 : vector<8x16xf32>
    %290 = arith.mulf %271, %289 : vector<8x16xf32>
    %291 = arith.addf %286, %290 : vector<8x16xf32>
    %292 = math.tanh %291 : vector<8x16xf32>
    %cst_102 = arith.constant 1.000000e+00 : f32
    %293 = vector.broadcast %cst_102 : f32 to vector<8x16xf32>
    %294 = arith.subf %293, %283 : vector<8x16xf32>
    %295 = arith.mulf %294, %292 : vector<8x16xf32>
    %296 = arith.mulf %283, %247 : vector<8x16xf32>
    %297 = arith.addf %295, %296 : vector<8x16xf32>
    %298 = arith.truncf %297 : vector<8x16xf32> to vector<8x16xbf16>
    %c2 = arith.constant 2 : index
    %c0_103 = arith.constant 0 : index
    %c0_104 = arith.constant 0 : index
    %299 = vector.load %arg4[%c2, %c0_103, %c0_104] : memref<16x16x16xbf16, #tpu.memory_space<vmem>>, vector<1x16x16xbf16>
    %300 = vector.shape_cast %299 : vector<1x16x16xbf16> to vector<16x16xbf16>
    %cst_105 = arith.constant dense<0.000000e+00> : vector<8x16xf32>
    %301 = tpu.matmul %0, %300, %cst_105 {dimension_numbers = #tpu.dot_dimension_numbers<[1], [0], [0], [1], [0, 0, 1, 1], [], []>} : vector<8x16xbf16>, vector<16x16xbf16>, vector<8x16xf32> -> vector<8x16xf32>
    %c3 = arith.constant 3 : index
    %c0_106 = arith.constant 0 : index
    %c0_107 = arith.constant 0 : index
    %302 = vector.load %arg4[%c3, %c0_106, %c0_107] : memref<16x16x16xbf16, #tpu.memory_space<vmem>>, vector<1x16x16xbf16>
    %303 = vector.shape_cast %302 : vector<1x16x16xbf16> to vector<16x16xbf16>
    %cst_108 = arith.constant dense<0.000000e+00> : vector<8x16xf32>
    %304 = tpu.matmul %298, %303, %cst_108 {dimension_numbers = #tpu.dot_dimension_numbers<[1], [0], [0], [1], [0, 0, 1, 1], [], []>} : vector<8x16xbf16>, vector<16x16xbf16>, vector<8x16xf32> -> vector<8x16xf32>
    %305 = arith.addf %301, %304 : vector<8x16xf32>
    %306 = vector.extract_strided_slice %5 {offsets = [2, 0], sizes = [1, 16], strides = [1, 1]} : vector<15x16xf32> to vector<1x16xf32>
    %307 = vector.broadcast %306 : vector<1x16xf32> to vector<8x16xf32>
    %308 = arith.addf %305, %307 : vector<8x16xf32>
    %cst_109 = arith.constant 0.000000e+00 : f32
    %309 = vector.broadcast %cst_109 : f32 to vector<8x16xf32>
    %310 = arith.maximumf %308, %309 : vector<8x16xf32>
    %311 = arith.truncf %310 : vector<8x16xf32> to vector<8x16xbf16>
    %c4 = arith.constant 4 : index
    %c0_110 = arith.constant 0 : index
    %c0_111 = arith.constant 0 : index
    %312 = vector.load %arg4[%c4, %c0_110, %c0_111] : memref<16x16x16xbf16, #tpu.memory_space<vmem>>, vector<1x16x16xbf16>
    %313 = vector.shape_cast %312 : vector<1x16x16xbf16> to vector<16x16xbf16>
    %cst_112 = arith.constant dense<0.000000e+00> : vector<8x16xf32>
    %314 = tpu.matmul %311, %313, %cst_112 {dimension_numbers = #tpu.dot_dimension_numbers<[1], [0], [0], [1], [0, 0, 1, 1], [], []>} : vector<8x16xbf16>, vector<16x16xbf16>, vector<8x16xf32> -> vector<8x16xf32>
    %315 = vector.extract_strided_slice %5 {offsets = [3, 0], sizes = [1, 16], strides = [1, 1]} : vector<15x16xf32> to vector<1x16xf32>
    %316 = vector.broadcast %315 : vector<1x16xf32> to vector<8x16xf32>
    %317 = arith.addf %314, %316 : vector<8x16xf32>
    %c0_113 = arith.constant 0 : index
    %c0_114 = arith.constant 0 : index
    %318 = vector.load %arg8[%c0_113, %c0_114] : memref<8x16xf32, #tpu.memory_space<vmem>>, vector<8x16xf32>
    tpu.vector_store %arg8[%c0_113, %c0_114], %317 {strides = array<i32>} : memref<8x16xf32, #tpu.memory_space<vmem>>, vector<8x16xf32>,
    %c5 = arith.constant 5 : index
    %c0_115 = arith.constant 0 : index
    %c0_116 = arith.constant 0 : index
    %319 = vector.load %arg4[%c5, %c0_115, %c0_116] : memref<16x16x16xbf16, #tpu.memory_space<vmem>>, vector<1x16x16xbf16>
    %320 = vector.shape_cast %319 : vector<1x16x16xbf16> to vector<16x16xbf16>
    %cst_117 = arith.constant dense<0.000000e+00> : vector<8x16xf32>
    %321 = tpu.matmul %311, %320, %cst_117 {dimension_numbers = #tpu.dot_dimension_numbers<[1], [0], [0], [1], [0, 0, 1, 1], [], []>} : vector<8x16xbf16>, vector<16x16xbf16>, vector<8x16xf32> -> vector<8x16xf32>
    %322 = vector.extract_strided_slice %5 {offsets = [4, 0], sizes = [1, 16], strides = [1, 1]} : vector<15x16xf32> to vector<1x16xf32>
    %323 = vector.broadcast %322 : vector<1x16xf32> to vector<8x16xf32>
    %324 = arith.addf %321, %323 : vector<8x16xf32>
    %c0_118 = arith.constant 0 : index
    %c0_119 = arith.constant 0 : index
    %325 = vector.load %arg9[%c0_118, %c0_119] : memref<8x16xf32, #tpu.memory_space<vmem>>, vector<8x16xf32>
    tpu.vector_store %arg9[%c0_118, %c0_119], %324 {strides = array<i32>} : memref<8x16xf32, #tpu.memory_space<vmem>>, vector<8x16xf32>,
    return
  }
}

</mosaic_0001>

<bundles_post_ra>
// kernel: tpu_custom_call.1
= control target key start
LH: loop header
LB: loop body
LE: loop exit
PB: predicated region body
PF: predicated region fallthrough
CT: control target
= control target key end

     0   :  { %16 = vsyncpa [#allocation4], 0  ;;  %s2078_s0 = inlined_call_operand.hbm [shape: bf16[8,16], index: 0, kind: input, shape index: {}]   ;;  %s2079_s1 = inlined_call_operand.hbm [shape: bf16[8,8], index: 1, kind: input, shape index: {}]   ;;  %s2080_s2 = inlined_call_operand.hbm [shape: bf16[8,8], index: 2, kind: input, shape index: {}]   ;;  %s2081_s3 = inlined_call_operand.vmem [shape: bf16[8,8], index: 3, kind: input, shape index: {}]   ;;  %s2082_s4 = inlined_call_operand.hbm [shape: bf16[16,16,16], index: 4, kind: input, shape index: {}]   ;;  %s2083_s5 = inlined_call_operand.hbm [shape: f32[15,16], index: 5, kind: input, shape index: {}]   ;;  %s2084_s6 = inlined_call_operand.hbm [shape: bf16[8,16], index: 6, kind: input, shape index: {}]   ;;  %s2085_s7 = inlined_call_operand.<no memory space> [shape: f32[1], index: 7, kind: input, shape index: {}]   ;;  %s2086_s8 = inlined_call_operand.hbm [shape: f32[8,16], index: 8, kind: output, shape index: {0}]   ;;  %s2087_s9 = inlined_call_operand.hbm [shape: f32[8,16], index: 9, kind: output, shape index: {1}]  }
   0x1   :  { %17 = vsyncpa [#allocation7], 0 }
   0x2   :  { %18 = vsyncpa [#allocation10], 0 }
   0x3   :  { %19 = vsyncpa [#allocation13], 0 }
   0x4   :  { %20 = vsyncpa [#allocation5], 0  ;;  %s38_s11 = sshll.u32 %s2079_s1, 4  ;;  %s39_s11 = int_to_ptr.hbm [resolvable:$true] %s38_s11 }
   0x5   :  { %21 = vsyncpa [#allocation16], 0  ;;  %s1798_s12 = smov [#allocation6]   ;;  %s61_s16 = sshll.u32 %s2082_s4, 4  ;;  %s62_s16 = int_to_ptr.hbm [resolvable:$true] %s61_s16 }
   0x6   :  { %s40_s13 = sshll.u32 %s1798_s12, 4  ;;  %s1799_s17 = smov [#allocation9]   ;;  %s41_s13 = int_to_ptr.vmem [resolvable:$true] %s40_s13 }
   0x7   :  { %43 = dma.hbm_to_vmem [thread:$0]  %s39_s11, 64, %s41_s13, [#allocation7]  }
   0x8   :  { %s63_s18 = sshll.u32 %s1799_s17, 4  ;;  %s1800_s19 = smov 64   ;;  %s64_s18 = int_to_ptr.vmem [resolvable:$true] %s63_s18 }
   0x9   :  { %s1801_s20 = smov 4   ;;  %s27_s1 = sshll.u32 %s2078_s0, 4  ;;  %s28_s1 = int_to_ptr.hbm [resolvable:$true] %s27_s1 }
   0xa   :  { %69 = dma.hbm_to_vmem [thread:$0]  %s62_s16, 2048, %s64_s18, [#allocation10], %s1800_s19, %s1800_s19, %s1801_s20  }
   0xb   :  { %s1802_s23 = smov [#allocation3]   ;;  %s49_s4 = sshll.u32 %s2080_s2, 4  ;;  %s50_s4 = int_to_ptr.hbm [resolvable:$true] %s49_s4 }
   0xc   :  { %s29_s24 = sshll.u32 %s1802_s23, 4  ;;  %s1803_s27 = smov [#allocation8]   ;;  %s30_s24 = int_to_ptr.vmem [resolvable:$true] %s29_s24 }
   0xd   :  { %32 = dma.hbm_to_vmem [thread:$0]  %s28_s1, 64, %s30_s24, [#allocation4]  }
   0xe   :  { %s51_s28 = sshll.u32 %s1803_s27, 4  ;;  %s74_s10 = sshll.u32 %s2083_s5, 4  ;;  %s52_s28 = int_to_ptr.vmem [resolvable:$true] %s51_s28  ;;  %s75_s10 = int_to_ptr.hbm [resolvable:$true] %s74_s10 }
   0xf   :  { %54 = dma.hbm_to_vmem [thread:$0]  %s50_s4, 64, %s52_s28, [#allocation7]  }
  0x10   :  { %s1804_s0 = smov [#allocation11]   ;;  %s88_s14 = sshll.u32 %s2084_s6, 4  ;;  %s89_s14 = int_to_ptr.hbm [resolvable:$true] %s88_s14 }
  0x11   :  { %s76_s11 = sshll.u32 %s1804_s0, 4  ;;  %s1805_s15 = smov 128   ;;  %s77_s11 = int_to_ptr.vmem [resolvable:$true] %s76_s11 }
  0x12   :  { %s1806_s2 = smov 8   ;;  %s1807_s16 = smov [#allocation12]  }
  0x13   :  { %82 = dma.hbm_to_vmem [thread:$0]  %s75_s10, 256, %s77_s11, [#allocation10], %s1805_s15, %s1805_s15, %s1806_s2  }
  0x14   :  { %s90_s17 = sshll.u32 %s1807_s16, 4  ;;  %s91_s17 = int_to_ptr.vmem [resolvable:$true] %s90_s17 }
  0x15   :  { %93 = dma.hbm_to_vmem [thread:$0]  %s89_s14, 64, %s91_s17, [#allocation13]  }
  0x16   :  { %1786 = dma.done.wait [#allocation4], 64  }
  0x17   :  { %1787 = vsyncadd [#allocation4], 4294967232 }
  0x18   :  { %1788 = dma.done.wait [#allocation7], 128  }
  0x19   :  { %1789 = vsyncadd [#allocation7], 4294967168 }
  0x1a   :  { %1790 = dma.done.wait [#allocation10], 2304  }
  0x1b   :  { %1791 = vsyncadd [#allocation10], 4294964992 }
  0x1c   :  { %1792 = dma.done.wait [#allocation13], 64  }
  0x1d   :  { %1793 = vsyncadd [#allocation13], 4294967232  ;;  %vm150_vm0 = vcmask 1043456   ;;  %v1878_v0 = vld [vmem:[#allocation8] sm:$0xf]  ;;  %vm146_vm1 = vcmask 64512   ;;  %v305_v43 = vstv %s2085_s7 }
  0x1e   :  { %v1883_v1 = vld [vmem:[%s2081_s3] sm:$0xf]  ;;  %v128_v4 = vld [vmem:[#allocation12] sm:$0xf]  ;;  %v123_v6 = vld [vmem:[#allocation6] sm:$0xf] }
  0x1f   :  { %v1885_v2 = vld [vmem:[#allocation3] sm:$0xf]  ;;  %1533 = vxpose.binary.xlu0.c.b16.start.end [1/2] (short) (narrow) %v1883_v1, %v1878_v0, 16  ;;  %v210_v5 = vsel %vm150_vm0, %v128_v4, 0  ;;  %v1505_v9 = vld [vmem:[#allocation9 + $0x8] sm:$0xff]  ;;  %v1504_v10 = vld [vmem:[#allocation9] sm:$0xff] }
  0x20   :  { %v152_v3 = vsel %vm150_vm0, %v1885_v2, 0  ;;  %219 = vmatpush.bf16.msra.mxu2 %v210_v5  ;;  %242 = vmatpush.bf16.msra.mxu3 %v1505_v9  ;;  %vm231_vm2 = vcmask 130048   ;;  %v1899_v20 = vld [vmem:[#allocation11] sm:$0xff]  ;;  %v424_v44 = vsel %vm146_vm1, %v1883_v1, 0  ;;  %v405_v45 = vsel %vm146_vm1, %v1878_v0, 0  ;;  %s1808_s7 = smov [#allocation14]  }
  0x21   :  { %161 = vmatpush.bf16.msra.mxu0 %v152_v3  ;;  %193 = vmatpush.bf16.msra.mxu1 %v152_v3  ;;  %v284_v23 = vperm.slane %v1899_v20, 0  ;;  %v303_v36 = vpack.c.bf16 %v1899_v20, %v1899_v20  ;;  %s1352_s19 = sshll.u32 %s1808_s7, 4  ;;  %s1354_s22 = sshll.u32 %s2086_s8, 4  ;;  %s1353_s19 = int_to_ptr.vmem [resolvable:$true] %s1352_s19  ;;  %s1355_s22 = int_to_ptr.hbm [resolvable:$true] %s1354_s22 }
  0x22   :  { %s1809_s1 = smov [#allocation15]   ;;  %s1365_s26 = sshll.u32 %s2087_s9, 4  ;;  %s1366_s26 = int_to_ptr.hbm [resolvable:$true] %s1365_s26 }
  0x23   :  { %1385 = vmatmul.msk.bf16.vlgmr.msra.gmra.mxu2 %vm146_vm1, %v123_v6  ;;  %v307_v39 = vshrl.u32 %v303_v36, 16  ;;  %s1363_s23 = sshll.u32 %s1809_s1, 4  ;;  %s1364_s23 = int_to_ptr.vmem [resolvable:$true] %s1363_s23 }
  0x24   :  { %294 = vmatpush.bf16.msrb.mxu2 %v1504_v10 }
  0x25   :  { %277 = vmatpush.bf16.msrb.mxu1 %v1504_v10  ;;  %258 = vmatpush.bf16.msrb.mxu0 %v1505_v9 }
  0x28   :  { %433 = vmatpush.bf16.xpose.msra.mxu2 %v424_v44 }
  0xa6   :  { %v221_v11 = vpop.f32.mrf.mxu2 }
  0xae   :  { %v223_v12 = vpop.f32.mrf.mxu2 }
  0xcb   :  { %v1534_v7 = vpop.trf.xlu0 }
  0xcc   :  { %1383 = vmatmul.msk.bf16.vlgmr.msra.gmra.mxu0 %vm146_vm1, %v1534_v7 }
  0xd3   :  { %v1535_v8 = vpop.trf.xlu0 }
  0xd4   :  { %1384 = vmatmul.msk.bf16.vlgmr.msra.gmra.mxu1 %vm146_vm1, %v1535_v8 }
  0xd5   :  { %414 = vmatpush.bf16.xpose.msra.mxu1 %v405_v45 }
 0x149   :  { %v163_v13 = vpop.f32.mrf.mxu0 }
 0x14a   :  { %v199_v14 = vpack.c.bf16 %v163_v13, %v163_v13 }
 0x14c   :  { %1390 = vmatmul.msk.bf16.vlgmr.msra.gmra.mxu3 %vm231_vm2, %v199_v14  ;;  %1396 = vmatmul.msk.bf16.vlgmr.msrb.gmra.mxu1 %vm231_vm2, %v199_v14 }
 0x151   :  { %v165_v15 = vpop.f32.mrf.mxu0  ;;  %v195_v16 = vpop.f32.mrf.mxu1 }
 0x152   :  { %v200_v17 = vpack.c.bf16 %v195_v16, %v195_v16 }
 0x154   :  { %1391 = vmatmul.msk.bf16.vlgmr.msrb.gmra.mxu0 %vm231_vm2, %v200_v17  ;;  %1397 = vmatmul.msk.bf16.vlgmr.msrb.gmra.mxu2 %vm231_vm2, %v200_v17 }
 0x159   :  { %v197_v18 = vpop.f32.mrf.mxu1 }
 0x1c9   :  { %v279_v19 = vpop.f32.mrf.mxu1 }
 0x1ca   :  { %v280_v22 = vadd.f32 %v279_v19, %v221_v11 }
 0x1cf   :  { %v244_v21 = vpop.f32.mrf.mxu3 }
 0x1d1   :  { %v260_v24 = vpop.f32.mrf.mxu0  ;;  %v281_v25 = vpop.f32.mrf.mxu1 }
 0x1d2   :  { %v283_v26 = vadd.f32 %v280_v22, %v260_v24  ;;  %v397_v25 = vunpack.c.l.bf16 %v1883_v1 }
 0x1d4   :  { %v285_v27 = vadd.f32 %v284_v23, %v283_v26 }
 0x1d6   :  { %v286_v28 = vmax.f32 %v285_v27, 0.0 }
 0x1d7   :  { %v246_v29 = vpop.f32.mrf.mxu3  ;;  %v296_v30 = vpop.f32.mrf.mxu2 }
 0x1d8   :  { %v297_v31 = vadd.f32 %v296_v30, %v221_v11  ;;  %v304_v32 = vpack.c.bf16 %v286_v28, %v286_v28 }
 0x1d9   :  { %v262_v33 = vpop.f32.mrf.mxu0 }
 0x1da   :  { %v300_v34 = vadd.f32 %v297_v31, %v244_v21  ;;  %v313_v35 = vsel %vm231_vm2, %v304_v32, 0  ;;  %v388_v21 = vunpack.c.l.bf16 %v1878_v0  ;;  %v1512_v32 = vld [vmem:[#allocation9 + $0x30] sm:$0xff] }
 0x1db   :  { %322 = vmatpush.bf16.xpose.msrb.mxu3 %v313_v35 }
 0x1dc   :  { %v301_v37 = vadd.f32 %v300_v34, %v284_v23 }
 0x1de   :  { %v302_v38 = vmax.f32 %v301_v37, 0.0 }
 0x1df   :  { %v298_v40 = vpop.f32.mrf.mxu2 }
 0x1e0   :  { %v347_v41 = vpack.c.bf16 %v302_v38, %v302_v38 }
 0x1e2   :  { %1398 = vmatmul.msk.bf16.vlgmr.msrb.gmra.mxu3 %vm231_vm2, %v307_v39  ;;  %v349_v42 = vsel %vm231_vm2, %v347_v41, 0 }
 0x1e3   :  { %358 = vmatpush.bf16.xpose.msra.mxu0 %v349_v42  ;;  %515 = vmatpush.bf16.msra.mxu3 %v1512_v32  ;;  %v1959_v32 = vld [vmem:[#allocation11 + $0x8] sm:$0x7f] }
 0x1ea   :  { %1400 = vmatmul.msk.bf16.vlgmr.msra.gmra.mxu0 %vm231_vm2, %v307_v39 }
 0x1f2   :  { %1408 = vmatmul.msk.bf16.vlgmr.msra.gmra.mxu3 %vm231_vm2, %v1885_v2 }
 0x265   :  { %v324_v46 = vpop.f32.mrf.mxu3 }
 0x266   :  { %v325_v47 = vadd.f32 %v324_v46, %v305_v43 }
 0x267   :  { %v360_v48 = vpop.f32.mrf.mxu0 }
 0x268   :  { %v1399_v49 = vmul.f32 -1.442695, %v325_v47  ;;  %v361_v50 = vadd.f32 %v360_v48, %v305_v43 }
 0x26a   :  { %1536 = vpow2.f32 %v1399_v49  ;;  %v1401_v51 = vmul.f32 -1.442695, %v361_v50 }
 0x26c   :  { %1538 = vpow2.f32 %v1401_v51 }
 0x26d   :  { %v326_v52 = vpop.f32.mrf.mxu3 }
 0x26f   :  { %v362_v53 = vpop.f32.mrf.mxu0 }
 0x270   :  { %v1537_v54 = vpop.eup %1536  ;;  %v1923_v53 = vld [vmem:[#allocation9 + $0x68] sm:$0xff] }
 0x271   :  { %v331_v55 = vadd.f32 1.0, %v1537_v54  ;;  %580 = vmatpush.bf16.msrb.mxu2 %v1923_v53 }
 0x272   :  { %v1539_v56 = vpop.eup %1538 }
 0x273   :  { %1540 = vrcp.f32 %v331_v55  ;;  %v367_v57 = vadd.f32 1.0, %v1539_v56  ;;  %v343_v62 = vand.u32 2147483648, %v331_v55  ;;  %v341_v4 = vand.u32 2147483647, %v331_v55 }
 0x274   :  { %vm337_vm4 = vweird.f32 %v331_v55 }
 0x275   :  { %1542 = vrcp.f32 %v367_v57  ;;  %v379_v7 = vand.u32 2147483648, %v367_v57  ;;  %v344_v8 = vor.u32 1.1754944e-38, %v343_v62  ;;  %v377_v10 = vand.u32 2147483647, %v367_v57  ;;  %v517_v44 = vpop.f32.mrf.mxu3 }
 0x276   :  { %vm342_vm7 = vcmp.eq.f32.partialorder %v341_v4, 8.507059e+37  ;;  %vm373_vm8 = vweird.f32 %v367_v57  ;;  %v521_v46 = vpack.c.bf16 %v517_v44, %v517_v44 }
 0x277   :  { %v380_v14 = vor.u32 1.1754944e-38, %v379_v7  ;;  %vm378_vm10 = vcmp.eq.f32.partialorder %v377_v10, 8.507059e+37 }
 0x278   :  { %v527_v47 = vsel %vm150_vm0, %v521_v46, 0 }
 0x279   :  { %v1541_v58 = vpop.eup %1540  ;;  %536 = vmatpush.bf16.msrb.mxu0 %v527_v47 }
 0x27a   :  { %v333_v59 = vmul.f32 %v1541_v58, %v331_v55  ;;  %vm338_vm3 = vweird.f32 %v1541_v58 }
 0x27b   :  { %v1543_v60 = vpop.eup %1542  ;;  %vm339_vm5 = vmor %vm337_vm4, %vm338_vm3 }
 0x27c   :  { %v334_v61 = vsub.f32 1.0, %v333_v59  ;;  %v369_v63 = vmul.f32 %v1543_v60, %v367_v57  ;;  %vm374_vm6 = vweird.f32 %v1543_v60 }
 0x27d   :  { %vm375_vm9 = vmor %vm373_vm8, %vm374_vm6  ;;  %v519_v49 = vpop.f32.mrf.mxu3 }
 0x27e   :  { %v335_v3 = vmul.f32 %v1541_v58, %v334_v61  ;;  %v370_v5 = vsub.f32 1.0, %v369_v63 }
 0x280   :  { %v336_v6 = vadd.f32 %v1541_v58, %v335_v3  ;;  %v371_v9 = vmul.f32 %v1543_v60, %v370_v5 }
 0x282   :  { %v340_v11 = vsel %vm339_vm5, %v1541_v58, %v336_v6  ;;  %v372_v12 = vadd.f32 %v1543_v60, %v371_v9 }
 0x283   :  { %v345_v13 = vsel %vm342_vm7, %v344_v8, %v340_v11 }
 0x284   :  { %v383_v15 = vpack.c.bf16 %v345_v13, %v345_v13  ;;  %v376_v16 = vsel %vm375_vm9, %v1543_v60, %v372_v12 }
 0x285   :  { %v381_v18 = vsel %vm378_vm10, %v380_v14, %v376_v16  ;;  %v1934_v16 = vld [vmem:[#allocation9 + $0x58] sm:$0xff] }
 0x286   :  { %v385_v17 = vpack.i.b16 %v383_v15, %v383_v15  ;;  %v392_v19 = vpack.c.bf16 %v381_v18, %v381_v18  ;;  %v1932_v15 = vld [vmem:[#allocation9 + $0x50] sm:$0xff]  ;;  %622 = vmatpush.bf16.msrb.mxu3 %v1934_v16  ;;  %v1941_v18 = vld [vmem:[#allocation9 + $0x60] sm:$0xff] }
 0x287   :  { %561 = vmatpush.bf16.msrb.mxu1 %v1932_v15 }
 0x288   :  { %v387_v22 = vperm.slane %v385_v17, 0  ;;  %v394_v23 = vpack.i.b16 %v392_v19, %v392_v19  ;;  %v1938_v17 = vld [vmem:[#allocation9 + $0x70] sm:$0xff]  ;;  %v1943_v19 = vld [vmem:[#allocation9 + $0x78] sm:$0xff] }
 0x289   :  { %641 = vmatpush.bf16.msra.mxu0 %v1938_v17 }
 0x28a   :  { %v389_v24 = vunpack.c.l.bf16 %v387_v22  ;;  %v396_v26 = vperm.slane %v394_v23, 0  ;;  %v522_v22 = vperm.slane %v1899_v20, 5 }
 0x28c   :  { %v390_v27 = vmul.f32 %v389_v24, %v388_v21  ;;  %v398_v28 = vunpack.c.l.bf16 %v396_v26 }
 0x28e   :  { %v391_v29 = vpack.c.bf16 %v390_v27, %v390_v27  ;;  %v399_v30 = vmul.f32 %v398_v28, %v397_v25 }
 0x290   :  { %1403 = vmatmul.msk.bf16.vlgmr.msra.gmra.mxu2 %vm146_vm1, %v391_v29  ;;  %v400_v31 = vpack.c.bf16 %v399_v30, %v399_v30 }
 0x291   :  { %703 = vmatpush.bf16.msra.mxu2 %v1943_v19 }
 0x292   :  { %1402 = vmatmul.msk.bf16.vlgmr.msra.gmra.mxu1 %vm146_vm1, %v400_v31 }
 0x293   :  { %683 = vmatpush.bf16.msra.mxu1 %v1941_v18 }
 0x2a0   :  { %1419 = vmatmul.msk.bf16.vlgmr.msrb.gmra.mxu2 %vm231_vm2, %v1885_v2 }
 0x2a1   :  { %785 = vmatpush.bf16.msrb.mxu2 %v1923_v53 }
 0x2b0   :  { %1441 = vmatmul.msk.bf16.vlgmr.msra.gmra.mxu2 %vm231_vm2, %v1885_v2 }
 0x2b1   :  { %879 = vmatpush.bf16.msra.mxu2 %v1943_v19 }
 0x30f   :  { %v416_v0 = vpop.f32.mrf.mxu1 }
 0x313   :  { %v435_v33 = vpop.f32.mrf.mxu2 }
 0x314   :  { %v436_v34 = vadd.f32 %v435_v33, %v416_v0  ;;  %v1962_v0 = vperm.slane %v1959_v32, 1 }
 0x316   :  { %v439_v1 = vsel %vm146_vm1, %v436_v34, 0.0 }
 0x317   :  { %440 = vadd.xlane.f32.xlu0 %v439_v1  ;;  %v418_v35 = vpop.f32.mrf.mxu1  ;;  %v442_v37 = vrot.slane %v439_v1, 4 }
 0x319   :  { %v443_v38 = vadd.f32 %v442_v37, %v439_v1  ;;  %v1966_v1 = vperm.slane %v1959_v32, 4  ;;  %v1969_v37 = vperm.slane %v1959_v32, 2 }
 0x31b   :  { %v437_v36 = vpop.f32.mrf.mxu2  ;;  %v444_v39 = vrot.slane %v443_v38, 2 }
 0x31d   :  { %v445_v40 = vadd.f32 %v444_v39, %v443_v38 }
 0x31f   :  { %v446_v41 = vrot.slane %v445_v40, 1 }
 0x321   :  { %v447_v42 = vadd.f32 %v446_v41, %v445_v40 }
 0x323   :  { %1544 = vrsqrt.f32 %v447_v42  ;;  %vm469_vm11 = vcmp.eq.f32.partialorder %v447_v42, inf  ;;  %v472_v63 = vand.u32 2147483648, %v447_v42  ;;  %vm471_vm12 = vcmp.eq.f32.partialorder %v447_v42, 0.0  ;;  %v582_v21 = vpop.f32.mrf.mxu2 }
 0x329   :  { %v1545_v43 = vpop.eup %1544 }
 0x32a   :  { %v463_v45 = vmul.f32 %v1545_v43, %v447_v42 }
 0x32b   :  { %v584_v23 = vpop.f32.mrf.mxu2 }
 0x32c   :  { %v464_v48 = vmul.f32 %v1545_v43, %v463_v45 }
 0x32e   :  { %v465_v51 = vmul.f32 0.5, %v464_v48  ;;  %v1513_v48 = vld [vmem:[#allocation9 + $0x38] sm:$0xff] }
 0x32f   :  { %736 = vmatpush.bf16.msra.mxu3 %v1513_v48 }
 0x330   :  { %v466_v52 = vsub.f32 1.5, %v465_v51 }
 0x332   :  { %v467_v56 = vmul.f32 %v1545_v43, %v466_v52 }
 0x333   :  { %v705_v31 = vpop.f32.mrf.mxu2 }
 0x334   :  { %v468_v59 = vmul.f32 %v467_v56, %v447_v42 }
 0x336   :  { %v470_v62 = vsel %vm469_vm11, %v447_v42, %v468_v59  ;;  %v1974_v42 = vperm.slane %v1959_v32, 5  ;;  %v1979_v59 = vperm.slane %v1959_v32, 6 }
 0x337   :  { %v473_v5 = vsel %vm471_vm12, %v472_v63, %v470_v62 }
 0x338   :  { %v474_v9 = vadd.f32 1e-06, %v473_v5 }
 0x33b   :  { %v707_v35 = vpop.f32.mrf.mxu2 }
 0x38a   :  { %v441_v50 = vpop.xlane.xlu0 %440 }
 0x38b   :  { %1546 = vrsqrt.f32 %v441_v50  ;;  %vm455_vm13 = vcmp.eq.f32.partialorder %v441_v50, inf  ;;  %v458_v4 = vand.u32 2147483648, %v441_v50  ;;  %vm457_vm14 = vcmp.eq.f32.partialorder %v441_v50, 0.0 }
 0x391   :  { %v1547_v54 = vpop.eup %1546 }
 0x392   :  { %v449_v55 = vmul.f32 %v1547_v54, %v441_v50 }
 0x394   :  { %v450_v57 = vmul.f32 %v1547_v54, %v449_v55 }
 0x396   :  { %v451_v58 = vmul.f32 0.5, %v450_v57 }
 0x398   :  { %v452_v60 = vsub.f32 1.5, %v451_v58 }
 0x39a   :  { %v453_v61 = vmul.f32 %v1547_v54, %v452_v60 }
 0x39c   :  { %v454_v3 = vmul.f32 %v453_v61, %v441_v50 }
 0x39e   :  { %v456_v6 = vsel %vm455_vm13, %v441_v50, %v454_v3  ;;  %v1982_v3 = vperm.slane %v1959_v32, 3 }
 0x39f   :  { %v459_v7 = vsel %vm457_vm14, %v458_v4, %v456_v6  ;;  %v706_v6 = vadd.f32 %v705_v31, %v1979_v59 }
 0x3a0   :  { %v460_v8 = vadd.f32 1e-06, %v459_v7 }
 0x3a2   :  { %1548 = vrcp.f32 %v460_v8 }
 0x3a3   :  { %1550 = vrcp.f32 %v474_v9 }
 0x3a8   :  { %v1549_v10 = vpop.eup %1548 }
 0x3a9   :  { %v476_v11 = vmul.f32 %v1549_v10, %v436_v34  ;;  %v1551_v12 = vpop.eup %1550 }
 0x3ab   :  { %v477_v13 = vmul.f32 %v1551_v12, %v476_v11 }
 0x3ad   :  { %v1928_v14 = vpack.c.bf16 %v477_v13, %v477_v13 }
 0x3af   :  { %1409 = vmatmul.msk.bf16.vlgmr.msrb.gmra.mxu0 %vm146_vm1, %v1928_v14 }
 0x3bf   :  { %1430 = vmatmul.msk.bf16.vlgmr.msra.gmra.mxu0 %vm231_vm2, %v1885_v2 }
 0x42c   :  { %v538_v24 = vpop.f32.mrf.mxu0 }
 0x42d   :  { %v539_v25 = vadd.f32 %v538_v24, %v522_v22 }
 0x42f   :  { %v542_v26 = vmax.f32 %v539_v25, 0.0 }
 0x431   :  { %v543_v27 = vpack.c.bf16 %v542_v26, %v542_v26 }
 0x433   :  { %1414 = vmatmul.msk.bf16.vlgmr.msrb.gmra.mxu1 %vm231_vm2, %v543_v27  ;;  %1425 = vmatmul.msk.bf16.vlgmr.msrb.gmra.mxu3 %vm231_vm2, %v543_v27 }
 0x434   :  { %v540_v28 = vpop.f32.mrf.mxu0  ;;  %772 = vmatpush.bf16.msrb.mxu1 %v1932_v15  ;;  %819 = vmatpush.bf16.msrb.mxu3 %v1934_v16 }
 0x435   :  { %v122_v28 = vunpack.c.l.bf16 %v1885_v2 }
 0x43c   :  { %v643_v29 = vpop.f32.mrf.mxu0 }
 0x443   :  { %1436 = vmatmul.msk.bf16.vlgmr.msra.gmra.mxu1 %vm231_vm2, %v543_v27 }
 0x444   :  { %866 = vmatpush.bf16.msra.mxu1 %v1941_v18  ;;  %v645_v30 = vpop.f32.mrf.mxu0 }
 0x4b0   :  { %v563_v33 = vpop.f32.mrf.mxu1 }
 0x4b1   :  { %v564_v34 = vadd.f32 %v563_v33, %v1962_v0 }
 0x4b3   :  { %v586_v36 = vadd.f32 %v582_v21, %v564_v34 }
 0x4b5   :  { %v588_v38 = vadd.f32 %v1966_v1, %v586_v36 }
 0x4b6   :  { %v624_v39 = vpop.f32.mrf.mxu3 }
 0x4b7   :  { %v1420_v40 = vmul.f32 -1.442695, %v588_v38  ;;  %v625_v41 = vadd.f32 %v624_v39, %v1969_v37 }
 0x4b8   :  { %v565_v43 = vpop.f32.mrf.mxu1 }
 0x4b9   :  { %1552 = vpow2.f32 %v1420_v40  ;;  %v647_v44 = vadd.f32 %v643_v29, %v625_v41 }
 0x4bb   :  { %v649_v45 = vadd.f32 %v1974_v42, %v647_v44 }
 0x4bd   :  { %v1431_v46 = vmul.f32 -1.442695, %v649_v45  ;;  %v743_v45 = vperm.slane %v1899_v20, 6 }
 0x4be   :  { %v626_v47 = vpop.f32.mrf.mxu3 }
 0x4bf   :  { %v1553_v49 = vpop.eup %1552  ;;  %1554 = vpow2.f32 %v1431_v46 }
 0x4c0   :  { %v592_v50 = vadd.f32 1.0, %v1553_v49  ;;  %v685_v51 = vpop.f32.mrf.mxu1 }
 0x4c1   :  { %v686_v10 = vadd.f32 %v685_v51, %v1982_v3 }
 0x4c2   :  { %1556 = vrcp.f32 %v592_v50  ;;  %v604_v60 = vand.u32 2147483648, %v592_v50  ;;  %v602_v62 = vand.u32 2147483647, %v592_v50  ;;  %vm598_vm3 = vweird.f32 %v592_v50 }
 0x4c4   :  { %v605_v7 = vor.u32 1.1754944e-38, %v604_v60  ;;  %vm603_vm5 = vcmp.eq.f32.partialorder %v602_v62, 8.507059e+37 }
 0x4c5   :  { %v1555_v52 = vpop.eup %1554 }
 0x4c6   :  { %v653_v54 = vadd.f32 1.0, %v1555_v52 }
 0x4c8   :  { %v1557_v55 = vpop.eup %1556  ;;  %1558 = vrcp.f32 %v653_v54  ;;  %v687_v56 = vpop.f32.mrf.mxu1  ;;  %v665_v13 = vand.u32 2147483648, %v653_v54  ;;  %v663_v22 = vand.u32 2147483647, %v653_v54  ;;  %vm659_vm7 = vweird.f32 %v653_v54 }
 0x4c9   :  { %v594_v57 = vmul.f32 %v1557_v55, %v592_v50  ;;  %vm599_vm15 = vweird.f32 %v1557_v55 }
 0x4ca   :  { %vm600_vm4 = vmor %vm598_vm3, %vm599_vm15  ;;  %v666_v26 = vor.u32 1.1754944e-38, %v665_v13  ;;  %vm664_vm9 = vcmp.eq.f32.partialorder %v663_v22, 8.507059e+37 }
 0x4cb   :  { %v595_v58 = vsub.f32 1.0, %v594_v57 }
 0x4cd   :  { %v596_v61 = vmul.f32 %v1557_v55, %v595_v58 }
 0x4ce   :  { %v1559_v63 = vpop.eup %1558 }
 0x4cf   :  { %v655_v4 = vmul.f32 %v1559_v63, %v653_v54  ;;  %v597_v5 = vadd.f32 %v1557_v55, %v596_v61  ;;  %vm660_vm6 = vweird.f32 %v1559_v63 }
 0x4d0   :  { %vm661_vm8 = vmor %vm659_vm7, %vm660_vm6 }
 0x4d1   :  { %v656_v8 = vsub.f32 1.0, %v655_v4  ;;  %v601_v9 = vsel %vm600_vm4, %v1557_v55, %v597_v5 }
 0x4d2   :  { %v606_v11 = vsel %vm603_vm5, %v605_v7, %v601_v9 }
 0x4d3   :  { %v657_v12 = vmul.f32 %v1559_v63, %v656_v8  ;;  %v709_v21 = vmul.f32 %v706_v6, %v606_v11 }
 0x4d5   :  { %v658_v23 = vadd.f32 %v1559_v63, %v657_v12  ;;  %v710_v24 = vadd.f32 %v709_v21, %v686_v10  ;;  %v1514_v10 = vld [vmem:[#allocation9 + $0x40] sm:$0xff] }
 0x4d7   :  { %v662_v25 = vsel %vm661_vm8, %v1559_v63, %v658_v23  ;;  %1560 = vtanh.f32 %v710_v24 }
 0x4d8   :  { %v667_v27 = vsel %vm664_vm9, %v666_v26, %v662_v25 }
 0x4d9   :  { %v712_v29 = vsub.f32 1.0, %v667_v27  ;;  %v714_v33 = vmul.f32 %v667_v27, %v122_v28 }
 0x4dd   :  { %v1561_v30 = vpop.eup %1560 }
 0x4de   :  { %v713_v31 = vmul.f32 %v1561_v30, %v712_v29 }
 0x4e0   :  { %v1987_v34 = vadd.f32 %v714_v33, %v713_v31 }
 0x4e2   :  { %v716_v35 = vpack.c.bf16 %v1987_v34, %v1987_v34 }
 0x4e4   :  { %1446 = vmatmul.msk.bf16.vlgmr.msra.gmra.mxu3 %vm231_vm2, %v716_v35  ;;  %1449 = vmatmul.msk.bf16.vlgmr.msrb.gmra.mxu2 %vm231_vm2, %v716_v35 }
 0x4e5   :  { %961 = vmatpush.bf16.msrb.mxu2 %v1923_v53  ;;  %912 = vmatpush.bf16.msra.mxu3 %v1514_v10 }
 0x4f4   :  { %1455 = vmatmul.msk.bf16.vlgmr.msra.gmra.mxu2 %vm231_vm2, %v716_v35 }
 0x4f5   :  { %1055 = vmatpush.bf16.msra.mxu2 %v1943_v19 }
 0x567   :  { %v738_v2 = vpop.f32.mrf.mxu3  ;;  %v787_v36 = vpop.f32.mrf.mxu2 }
 0x568   :  { %v742_v38 = vpack.c.bf16 %v738_v2, %v738_v2 }
 0x56a   :  { %v745_v39 = vsel %vm150_vm0, %v742_v38, 0 }
 0x56b   :  { %754 = vmatpush.bf16.msrb.mxu0 %v745_v39 }
 0x56e   :  { %1447 = vmatmul.msk.bf16.vlgmr.msrb.gmra.mxu0 %vm146_vm1, %v1928_v14 }
 0x56f   :  { %832 = vmatpush.bf16.msra.mxu0 %v1938_v17  ;;  %v740_v40 = vpop.f32.mrf.mxu3  ;;  %v789_v41 = vpop.f32.mrf.mxu2 }
 0x577   :  { %v881_v43 = vpop.f32.mrf.mxu2 }
 0x578   :  { %v882_v31 = vadd.f32 %v881_v43, %v1979_v59 }
 0x57e   :  { %1452 = vmatmul.msk.bf16.vlgmr.msra.gmra.mxu0 %vm231_vm2, %v716_v35 }
 0x57f   :  { %v883_v44 = vpop.f32.mrf.mxu2 }
 0x5eb   :  { %v756_v46 = vpop.f32.mrf.mxu0 }
 0x5ec   :  { %v757_v47 = vadd.f32 %v756_v46, %v743_v45 }
 0x5ee   :  { %v760_v48 = vmax.f32 %v757_v47, 0.0 }
 0x5f0   :  { %v761_v49 = vpack.c.bf16 %v760_v48, %v760_v48 }
 0x5f2   :  { %1448 = vmatmul.msk.bf16.vlgmr.msrb.gmra.mxu1 %vm231_vm2, %v761_v49  ;;  %1451 = vmatmul.msk.bf16.vlgmr.msrb.gmra.mxu3 %vm231_vm2, %v761_v49 }
 0x5f3   :  { %v758_v50 = vpop.f32.mrf.mxu0  ;;  %948 = vmatpush.bf16.msrb.mxu1 %v1932_v15  ;;  %995 = vmatpush.bf16.msrb.mxu3 %v1934_v16 }
 0x5fb   :  { %v834_v51 = vpop.f32.mrf.mxu0 }
 0x602   :  { %1454 = vmatmul.msk.bf16.vlgmr.msra.gmra.mxu1 %vm231_vm2, %v761_v49 }
 0x603   :  { %v836_v52 = vpop.f32.mrf.mxu0  ;;  %1042 = vmatpush.bf16.msra.mxu1 %v1941_v18 }
 0x66f   :  { %v774_v54 = vpop.f32.mrf.mxu1 }
 0x670   :  { %v775_v55 = vadd.f32 %v774_v54, %v1962_v0 }
 0x672   :  { %v791_v56 = vadd.f32 %v787_v36, %v775_v55 }
 0x674   :  { %v792_v57 = vadd.f32 %v791_v56, %v1966_v1 }
 0x675   :  { %v821_v58 = vpop.f32.mrf.mxu3 }
 0x676   :  { %v1450_v60 = vmul.f32 -1.442695, %v792_v57  ;;  %v822_v61 = vadd.f32 %v821_v58, %v1969_v37 }
 0x677   :  { %v776_v62 = vpop.f32.mrf.mxu1 }
 0x678   :  { %1562 = vpow2.f32 %v1450_v60  ;;  %v838_v63 = vadd.f32 %v834_v51, %v822_v61  ;;  %v919_v62 = vperm.slane %v1899_v20, 7 }
 0x67a   :  { %v839_v4 = vadd.f32 %v838_v63, %v1974_v42 }
 0x67c   :  { %v1453_v5 = vmul.f32 -1.442695, %v839_v4 }
 0x67d   :  { %v823_v6 = vpop.f32.mrf.mxu3 }
 0x67e   :  { %v1563_v7 = vpop.eup %1562  ;;  %1564 = vpow2.f32 %v1453_v5 }
 0x67f   :  { %v796_v8 = vadd.f32 1.0, %v1563_v7  ;;  %v868_v9 = vpop.f32.mrf.mxu1 }
 0x680   :  { %v869_v36 = vadd.f32 %v868_v9, %v1982_v3 }
 0x681   :  { %1566 = vrcp.f32 %v796_v8  ;;  %v808_v24 = vand.u32 2147483648, %v796_v8  ;;  %v806_v26 = vand.u32 2147483647, %v796_v8  ;;  %vm802_vm11 = vweird.f32 %v796_v8 }
 0x683   :  { %v809_v30 = vor.u32 1.1754944e-38, %v808_v24  ;;  %vm807_vm13 = vcmp.eq.f32.partialorder %v806_v26, 8.507059e+37 }
 0x684   :  { %v1565_v11 = vpop.eup %1564 }
 0x685   :  { %v843_v12 = vadd.f32 1.0, %v1565_v11 }
 0x687   :  { %v1567_v13 = vpop.eup %1566  ;;  %1568 = vrcp.f32 %v843_v12  ;;  %v870_v21 = vpop.f32.mrf.mxu1  ;;  %v855_v39 = vand.u32 2147483648, %v843_v12  ;;  %v853_v41 = vand.u32 2147483647, %v843_v12  ;;  %vm849_vm15 = vweird.f32 %v843_v12 }
 0x688   :  { %v798_v22 = vmul.f32 %v1567_v13, %v796_v8  ;;  %vm803_vm10 = vweird.f32 %v1567_v13 }
 0x689   :  { %vm804_vm12 = vmor %vm802_vm11, %vm803_vm10  ;;  %v856_v47 = vor.u32 1.1754944e-38, %v855_v39  ;;  %vm854_vm4 = vcmp.eq.f32.partialorder %v853_v41, 8.507059e+37 }
 0x68a   :  { %v799_v23 = vsub.f32 1.0, %v798_v22 }
 0x68c   :  { %v800_v25 = vmul.f32 %v1567_v13, %v799_v23 }
 0x68d   :  { %v1569_v27 = vpop.eup %1568 }
 0x68e   :  { %v845_v28 = vmul.f32 %v1569_v27, %v843_v12  ;;  %v801_v29 = vadd.f32 %v1567_v13, %v800_v25  ;;  %vm850_vm14 = vweird.f32 %v1569_v27 }
 0x68f   :  { %vm851_vm3 = vmor %vm849_vm15, %vm850_vm14 }
 0x690   :  { %v846_v33 = vsub.f32 1.0, %v845_v28  ;;  %v805_v35 = vsel %vm804_vm12, %v1567_v13, %v801_v29  ;;  %v1515_v28 = vld [vmem:[#allocation9 + $0x48] sm:$0xff] }
 0x691   :  { %v810_v2 = vsel %vm807_vm13, %v809_v30, %v805_v35 }
 0x692   :  { %v847_v38 = vmul.f32 %v1569_v27, %v846_v33  ;;  %v885_v40 = vmul.f32 %v882_v31, %v810_v2 }
 0x694   :  { %v848_v44 = vadd.f32 %v1569_v27, %v847_v38  ;;  %v886_v45 = vadd.f32 %v885_v40, %v869_v36 }
 0x696   :  { %v852_v46 = vsel %vm851_vm3, %v1569_v27, %v848_v44  ;;  %1570 = vtanh.f32 %v886_v45 }
 0x697   :  { %v857_v43 = vsel %vm854_vm4, %v856_v47, %v852_v46 }
 0x698   :  { %v888_v48 = vsub.f32 1.0, %v857_v43  ;;  %v890_v51 = vmul.f32 %v857_v43, %v1987_v34 }
 0x69c   :  { %v1571_v49 = vpop.eup %1570 }
 0x69d   :  { %v889_v50 = vmul.f32 %v1571_v49, %v888_v48 }
 0x69f   :  { %v2015_v52 = vadd.f32 %v890_v51, %v889_v50 }
 0x6a1   :  { %v892_v54 = vpack.c.bf16 %v2015_v52, %v2015_v52 }
 0x6a3   :  { %1460 = vmatmul.msk.bf16.vlgmr.msra.gmra.mxu3 %vm231_vm2, %v892_v54  ;;  %1463 = vmatmul.msk.bf16.vlgmr.msrb.gmra.mxu2 %vm231_vm2, %v892_v54 }
 0x6a4   :  { %1137 = vmatpush.bf16.msrb.mxu2 %v1923_v53  ;;  %1088 = vmatpush.bf16.msra.mxu3 %v1515_v28 }
 0x6b3   :  { %1469 = vmatmul.msk.bf16.vlgmr.msra.gmra.mxu2 %vm231_vm2, %v892_v54 }
 0x6b4   :  { %1231 = vmatpush.bf16.msra.mxu2 %v1943_v19 }
 0x726   :  { %v914_v55 = vpop.f32.mrf.mxu3  ;;  %v963_v56 = vpop.f32.mrf.mxu2 }
 0x727   :  { %v918_v57 = vpack.c.bf16 %v914_v55, %v914_v55 }
 0x729   :  { %v921_v34 = vsel %vm150_vm0, %v918_v57, 0 }
 0x72a   :  { %930 = vmatpush.bf16.msrb.mxu0 %v921_v34 }
 0x72d   :  { %1461 = vmatmul.msk.bf16.vlgmr.msrb.gmra.mxu0 %vm146_vm1, %v1928_v14 }
 0x72e   :  { %1008 = vmatpush.bf16.msra.mxu0 %v1938_v17  ;;  %v916_v58 = vpop.f32.mrf.mxu3  ;;  %v965_v60 = vpop.f32.mrf.mxu2 }
 0x736   :  { %v1057_v61 = vpop.f32.mrf.mxu2 }
 0x737   :  { %v1058_v46 = vadd.f32 %v1057_v61, %v1979_v59 }
 0x73d   :  { %1466 = vmatmul.msk.bf16.vlgmr.msra.gmra.mxu0 %vm231_vm2, %v892_v54 }
 0x73e   :  { %v1059_v53 = vpop.f32.mrf.mxu2 }
 0x7aa   :  { %v932_v19 = vpop.f32.mrf.mxu0 }
 0x7ab   :  { %v933_v63 = vadd.f32 %v932_v19, %v919_v62 }
 0x7ad   :  { %v936_v4 = vmax.f32 %v933_v63, 0.0 }
 0x7af   :  { %v937_v5 = vpack.c.bf16 %v936_v4, %v936_v4 }
 0x7b1   :  { %1462 = vmatmul.msk.bf16.vlgmr.msrb.gmra.mxu1 %vm231_vm2, %v937_v5  ;;  %1465 = vmatmul.msk.bf16.vlgmr.msrb.gmra.mxu3 %vm231_vm2, %v937_v5 }
 0x7b2   :  { %v934_v6 = vpop.f32.mrf.mxu0  ;;  %1124 = vmatpush.bf16.msrb.mxu1 %v1932_v15  ;;  %1171 = vmatpush.bf16.msrb.mxu3 %v1934_v16 }
 0x7ba   :  { %v1010_v7 = vpop.f32.mrf.mxu0 }
 0x7c1   :  { %1468 = vmatmul.msk.bf16.vlgmr.msra.gmra.mxu1 %vm231_vm2, %v937_v5 }
 0x7c2   :  { %v1012_v8 = vpop.f32.mrf.mxu0  ;;  %1218 = vmatpush.bf16.msra.mxu1 %v1941_v18 }
 0x82e   :  { %v950_v9 = vpop.f32.mrf.mxu1 }
 0x82f   :  { %v951_v20 = vadd.f32 %v950_v9, %v1962_v0 }
 0x831   :  { %v967_v10 = vadd.f32 %v963_v56, %v951_v20 }
 0x833   :  { %v968_v11 = vadd.f32 %v967_v10, %v1966_v1  ;;  %v1095_v10 = vperm.slane %v1959_v32, 0 }
 0x834   :  { %v997_v12 = vpop.f32.mrf.mxu3 }
 0x835   :  { %v1464_v13 = vmul.f32 -1.442695, %v968_v11  ;;  %v998_v21 = vadd.f32 %v997_v12, %v1969_v37 }
 0x836   :  { %v952_v22 = vpop.f32.mrf.mxu1 }
 0x837   :  { %1572 = vpow2.f32 %v1464_v13  ;;  %v1014_v23 = vadd.f32 %v1010_v7, %v998_v21 }
 0x839   :  { %v1015_v15 = vadd.f32 %v1014_v23, %v1974_v42 }
 0x83b   :  { %v1467_v24 = vmul.f32 -1.442695, %v1015_v15 }
 0x83c   :  { %v999_v25 = vpop.f32.mrf.mxu3 }
 0x83d   :  { %v1573_v26 = vpop.eup %1572  ;;  %1574 = vpow2.f32 %v1467_v24 }
 0x83e   :  { %v972_v18 = vadd.f32 1.0, %v1573_v26  ;;  %v1044_v27 = vpop.f32.mrf.mxu1 }
 0x83f   :  { %v1045_v48 = vadd.f32 %v1044_v27, %v1982_v3 }
 0x840   :  { %1576 = vrcp.f32 %v972_v18  ;;  %v984_v36 = vand.u32 2147483648, %v972_v18  ;;  %v982_v39 = vand.u32 2147483647, %v972_v18  ;;  %vm978_vm6 = vweird.f32 %v972_v18 }
 0x842   :  { %v985_v45 = vor.u32 1.1754944e-38, %v984_v36  ;;  %vm983_vm8 = vcmp.eq.f32.partialorder %v982_v39, 8.507059e+37 }
 0x843   :  { %v1575_v29 = vpop.eup %1574 }
 0x844   :  { %v1019_v30 = vadd.f32 1.0, %v1575_v29 }
 0x846   :  { %v1577_v31 = vpop.eup %1576  ;;  %1578 = vrcp.f32 %v1019_v30  ;;  %v1046_v33 = vpop.f32.mrf.mxu1  ;;  %v1031_v50 = vand.u32 2147483648, %v1019_v30  ;;  %v1029_v54 = vand.u32 2147483647, %v1019_v30  ;;  %vm1025_vm10 = vweird.f32 %v1019_v30 }
 0x847   :  { %v974_v35 = vmul.f32 %v1577_v31, %v972_v18  ;;  %vm979_vm5 = vweird.f32 %v1577_v31  ;;  %v1516_v33 = vld [vmem:[#allocation9 + $0x10] sm:$0xff] }
 0x848   :  { %vm980_vm7 = vmor %vm978_vm6, %vm979_vm5  ;;  %v1032_v34 = vor.u32 1.1754944e-38, %v1031_v50  ;;  %vm1030_vm12 = vcmp.eq.f32.partialorder %v1029_v54, 8.507059e+37 }
 0x849   :  { %v975_v2 = vsub.f32 1.0, %v974_v35 }
 0x84b   :  { %v976_v38 = vmul.f32 %v1577_v31, %v975_v2 }
 0x84c   :  { %v1579_v40 = vpop.eup %1578 }
 0x84d   :  { %v1021_v41 = vmul.f32 %v1579_v40, %v1019_v30  ;;  %v977_v44 = vadd.f32 %v1577_v31, %v976_v38  ;;  %vm1026_vm9 = vweird.f32 %v1579_v40 }
 0x84e   :  { %vm1027_vm11 = vmor %vm1025_vm10, %vm1026_vm9 }
 0x84f   :  { %v1022_v16 = vsub.f32 1.0, %v1021_v41  ;;  %v981_v47 = vsel %vm980_vm7, %v1577_v31, %v977_v44 }
 0x850   :  { %v986_v43 = vsel %vm983_vm8, %v985_v45, %v981_v47 }
 0x851   :  { %v1023_v49 = vmul.f32 %v1579_v40, %v1022_v16  ;;  %v1061_v51 = vmul.f32 %v1058_v46, %v986_v43 }
 0x853   :  { %v1024_v55 = vadd.f32 %v1579_v40, %v1023_v49  ;;  %v1062_v56 = vadd.f32 %v1061_v51, %v1045_v48 }
 0x855   :  { %v1028_v57 = vsel %vm1027_vm11, %v1579_v40, %v1024_v55  ;;  %1580 = vtanh.f32 %v1062_v56 }
 0x856   :  { %v1033_v58 = vsel %vm1030_vm12, %v1032_v34, %v1028_v57 }
 0x857   :  { %v1064_v60 = vsub.f32 1.0, %v1033_v58  ;;  %v1066_v62 = vmul.f32 %v1033_v58, %v2015_v52 }
 0x85b   :  { %v1581_v61 = vpop.eup %1580 }
 0x85c   :  { %v1065_v53 = vmul.f32 %v1581_v61, %v1064_v60 }
 0x85e   :  { %v2043_v19 = vadd.f32 %v1066_v62, %v1065_v53 }
 0x860   :  { %v1068_v63 = vpack.c.bf16 %v2043_v19, %v2043_v19 }
 0x862   :  { %1474 = vmatmul.msk.bf16.vlgmr.msra.gmra.mxu3 %vm231_vm2, %v1068_v63  ;;  %1477 = vmatmul.msk.bf16.vlgmr.msrb.gmra.mxu2 %vm231_vm2, %v1068_v63 }
 0x872   :  { %1483 = vmatmul.msk.bf16.vlgmr.msra.gmra.mxu2 %vm231_vm2, %v1068_v63 }
 0x8e5   :  { %v1090_v4 = vpop.f32.mrf.mxu3  ;;  %v1139_v5 = vpop.f32.mrf.mxu2 }
 0x8e6   :  { %v1094_v6 = vpack.c.bf16 %v1090_v4, %v1090_v4 }
 0x8e8   :  { %v1097_v7 = vsel %vm150_vm0, %v1094_v6, 0 }
 0x8e9   :  { %1106 = vmatpush.bf16.msrb.mxu0 %v1097_v7 }
 0x8ec   :  { %1475 = vmatmul.msk.bf16.vlgmr.msrb.gmra.mxu0 %vm146_vm1, %v1928_v14 }
 0x8ed   :  { %1184 = vmatpush.bf16.msra.mxu0 %v1938_v17  ;;  %v1092_v52 = vpop.f32.mrf.mxu3  ;;  %v1141_v8 = vpop.f32.mrf.mxu2 }
 0x8f1   :  { %1286 = vmatpush.bf16.msrb.mxu0 %v1516_v33 }
 0x8f5   :  { %v1233_v9 = vpop.f32.mrf.mxu2 }
 0x8f6   :  { %v1234_v49 = vadd.f32 %v1233_v9, %v1979_v59  ;;  %v1518_v9 = vld [vmem:[#allocation9 + $0x20] sm:$0xff] }
 0x8fc   :  { %1480 = vmatmul.msk.bf16.vlgmr.msra.gmra.mxu0 %vm231_vm2, %v1068_v63 }
 0x8fd   :  { %v1235_v20 = vpop.f32.mrf.mxu2 }
 0x8fe   :  { %v1519_v20 = vld [vmem:[#allocation9 + $0x28] sm:$0xff] }
 0x8ff   :  { %1340 = vmatpush.bf16.msrb.mxu2 %v1519_v20 }
 0x969   :  { %v1108_v11 = vpop.f32.mrf.mxu0 }
 0x96a   :  { %v1109_v12 = vadd.f32 %v1108_v11, %v1095_v10  ;;  %v1593_v10 = vld [vmem:[#allocation11] sm:$0xff] }
 0x96b   :  { %v1292_v11 = vperm.slane %v1593_v10, 2 }
 0x96c   :  { %v1112_v13 = vmax.f32 %v1109_v12, 0.0 }
 0x96e   :  { %v1113_v21 = vpack.c.bf16 %v1112_v13, %v1112_v13 }
 0x970   :  { %1476 = vmatmul.msk.bf16.vlgmr.msrb.gmra.mxu1 %vm231_vm2, %v1113_v21  ;;  %1479 = vmatmul.msk.bf16.vlgmr.msrb.gmra.mxu3 %vm231_vm2, %v1113_v21 }
 0x971   :  { %v1110_v17 = vpop.f32.mrf.mxu0  ;;  %1316 = vmatpush.bf16.msrb.mxu1 %v1518_v9 }
 0x979   :  { %v1186_v22 = vpop.f32.mrf.mxu0 }
 0x980   :  { %1482 = vmatmul.msk.bf16.vlgmr.msra.gmra.mxu1 %vm231_vm2, %v1113_v21 }
 0x981   :  { %v1188_v14 = vpop.f32.mrf.mxu0 }
 0x9ed   :  { %v1126_v23 = vpop.f32.mrf.mxu1 }
 0x9ee   :  { %v1127_v15 = vadd.f32 %v1126_v23, %v1962_v0  ;;  %v1517_v0 = vld [vmem:[#allocation9 + $0x18] sm:$0xff] }
 0x9ef   :  { %1267 = vmatpush.bf16.msra.mxu3 %v1517_v0 }
 0x9f0   :  { %v1143_v24 = vadd.f32 %v1139_v5, %v1127_v15 }
 0x9f2   :  { %v1144_v25 = vadd.f32 %v1143_v24, %v1966_v1  ;;  %v1592_v1 = vld [vmem:[#allocation3] sm:$0xf]  ;;  %v1326_v24 = vperm.slane %v1593_v10, 4 }
 0x9f3   :  { %v1173_v32 = vpop.f32.mrf.mxu3  ;;  %1493 = vmatmul.msk.bf16.vlgmr.msrb.gmra.mxu0 %vm231_vm2, %v1592_v1 }
 0x9f4   :  { %v1478_v26 = vmul.f32 -1.442695, %v1144_v25  ;;  %v1174_v18 = vadd.f32 %v1173_v32, %v1969_v37 }
 0x9f5   :  { %v1128_v27 = vpop.f32.mrf.mxu1 }
 0x9f6   :  { %1582 = vpow2.f32 %v1478_v26  ;;  %v1190_v28 = vadd.f32 %v1186_v22, %v1174_v18 }
 0x9f8   :  { %v1191_v29 = vadd.f32 %v1190_v28, %v1974_v42 }
 0x9fa   :  { %v1481_v30 = vmul.f32 -1.442695, %v1191_v29 }
 0x9fb   :  { %v1175_v31 = vpop.f32.mrf.mxu3 }
 0x9fc   :  { %v1583_v35 = vpop.eup %1582  ;;  %1584 = vpow2.f32 %v1481_v30 }
 0x9fd   :  { %v1148_v2 = vadd.f32 1.0, %v1583_v35  ;;  %v1220_v36 = vpop.f32.mrf.mxu1 }
 0x9fe   :  { %v1221_v55 = vadd.f32 %v1220_v36, %v1982_v3 }
 0x9ff   :  { %1586 = vrcp.f32 %v1148_v2  ;;  %v1160_v44 = vand.u32 2147483648, %v1148_v2  ;;  %v1158_v46 = vand.u32 2147483647, %v1148_v2  ;;  %vm1154_vm1 = vweird.f32 %v1148_v2 }
 0xa01   :  { %v1161_v48 = vor.u32 1.1754944e-38, %v1160_v44  ;;  %vm1159_vm14 = vcmp.eq.f32.partialorder %v1158_v46, 8.507059e+37 }
 0xa02   :  { %v1585_v37 = vpop.eup %1584 }
 0xa03   :  { %v1195_v38 = vadd.f32 1.0, %v1585_v37 }
 0xa05   :  { %v1587_v39 = vpop.eup %1586  ;;  %1588 = vrcp.f32 %v1195_v38  ;;  %v1222_v40 = vpop.f32.mrf.mxu1  ;;  %v1207_v57 = vand.u32 2147483648, %v1195_v38  ;;  %v1205_v58 = vand.u32 2147483647, %v1195_v38  ;;  %vm1201_vm3 = vweird.f32 %v1195_v38 }
 0xa06   :  { %v1150_v42 = vmul.f32 %v1587_v39, %v1148_v2  ;;  %vm1155_vm0 = vweird.f32 %v1587_v39 }
 0xa07   :  { %vm1156_vm13 = vmor %vm1154_vm1, %vm1155_vm0  ;;  %v1208_v62 = vor.u32 1.1754944e-38, %v1207_v57  ;;  %vm1206_vm5 = vcmp.eq.f32.partialorder %v1205_v58, 8.507059e+37 }
 0xa08   :  { %v1151_v41 = vsub.f32 1.0, %v1150_v42 }
 0xa0a   :  { %v1152_v45 = vmul.f32 %v1587_v39, %v1151_v41 }
 0xa0b   :  { %v1589_v16 = vpop.eup %1588 }
 0xa0c   :  { %v1197_v47 = vmul.f32 %v1589_v16, %v1195_v38  ;;  %v1153_v43 = vadd.f32 %v1587_v39, %v1152_v45  ;;  %vm1202_vm15 = vweird.f32 %v1589_v16 }
 0xa0d   :  { %vm1203_vm4 = vmor %vm1201_vm3, %vm1202_vm15 }
 0xa0e   :  { %v1198_v50 = vsub.f32 1.0, %v1197_v47  ;;  %v1157_v51 = vsel %vm1156_vm13, %v1587_v39, %v1153_v43 }
 0xa0f   :  { %v1162_v54 = vsel %vm1159_vm14, %v1161_v48, %v1157_v51 }
 0xa10   :  { %v1199_v56 = vmul.f32 %v1589_v16, %v1198_v50  ;;  %v1237_v34 = vmul.f32 %v1234_v49, %v1162_v54 }
 0xa12   :  { %v1200_v60 = vadd.f32 %v1589_v16, %v1199_v56  ;;  %v1238_v61 = vadd.f32 %v1237_v34, %v1221_v55 }
 0xa14   :  { %v1204_v53 = vsel %vm1203_vm4, %v1589_v16, %v1200_v60  ;;  %1590 = vtanh.f32 %v1238_v61 }
 0xa15   :  { %v1209_v59 = vsel %vm1206_vm5, %v1208_v62, %v1204_v53 }
 0xa16   :  { %v1240_v63 = vsub.f32 1.0, %v1209_v59  ;;  %v1242_v6 = vmul.f32 %v1209_v59, %v2043_v19  ;;  %v1299_v19 = vperm.slane %v1593_v10, 3 }
 0xa1a   :  { %v1591_v4 = vpop.eup %1590 }
 0xa1b   :  { %v1241_v5 = vmul.f32 %v1591_v4, %v1240_v63 }
 0xa1d   :  { %v1243_v3 = vadd.f32 %v1242_v6, %v1241_v5 }
 0xa1f   :  { %v1244_v7 = vpack.c.bf16 %v1243_v3, %v1243_v3 }
 0xa21   :  { %1488 = vmatmul.msk.bf16.vlgmr.msra.gmra.mxu3 %vm231_vm2, %v1244_v7 }
 0xa70   :  { %v1288_v52 = vpop.f32.mrf.mxu0 }
 0xa78   :  { %v1290_v8 = vpop.f32.mrf.mxu0 }
 0xaa4   :  { %v1269_v12 = vpop.f32.mrf.mxu3 }
 0xaa5   :  { %v1289_v13 = vadd.f32 %v1288_v52, %v1269_v12 }
 0xaa7   :  { %v1293_v21 = vadd.f32 %v1292_v11, %v1289_v13 }
 0xaa9   :  { %v1294_v17 = vmax.f32 %v1293_v21, 0.0 }
 0xaab   :  { %v1295_v22 = vpack.c.bf16 %v1294_v17, %v1294_v17 }
 0xaac   :  { %v1271_v14 = vpop.f32.mrf.mxu3 }
 0xaad   :  { %1498 = vmatmul.msk.bf16.vlgmr.msrb.gmra.mxu1 %vm231_vm2, %v1295_v22  ;;  %1503 = vmatmul.msk.bf16.vlgmr.msrb.gmra.mxu2 %vm231_vm2, %v1295_v22 }
 0xb2a   :  { %v1318_v23 = vpop.f32.mrf.mxu1 }
 0xb2b   :  { %v1319_v15 = vadd.f32 %v1318_v23, %v1299_v19 }
 0xb2d   :  { %1322 = vst.msk [vmem:[#allocation14] sm:$0xff] %vm231_vm2, %v1319_v15 }
 0xb2e   :  { %1357 = dma.vmem_to_hbm [thread:$0]  %s1353_s19, 128, %s1355_s22, [#allocation5]  }
 0xb30   :  { %v1342_v25 = vpop.f32.mrf.mxu2 }
 0xb31   :  { %v1343_v32 = vadd.f32 %v1342_v25, %v1326_v24 }
 0xb32   :  { %v1320_v26 = vpop.f32.mrf.mxu1 }
 0xb33   :  { %1346 = vst.msk [vmem:[#allocation15] sm:$0xff] %vm231_vm2, %v1343_v32 }
 0xb34   :  { %1368 = dma.vmem_to_hbm [thread:$0]  %s1364_s23, 128, %s1366_s26, [#allocation16]  }
 0xb38   :  { %v1344_v18 = vpop.f32.mrf.mxu2 }
 0xb39   :  { %1794 = dma.done.wait [#allocation5], 128  }
 0xb3a   :  { %1795 = vsyncadd [#allocation5], 4294967168 }
 0xb3b   :  { %1796 = dma.done.wait [#allocation16], 128  }
 0xb3c   :  { %1797 = vsyncadd [#allocation16], 4294967168 }
 0xb3d   :  { %1377 = vsyncpa [#allocation4], 1 }
 0xb3e   :  { %1378 = vsyncpa [#allocation7], 1 }
 0xb3f   :  { %1379 = vsyncpa [#allocation10], 1 }
 0xb40   :  { %1380 = vsyncpa [#allocation13], 1 }
 0xb41   :  { %1381 = vsyncpa [#allocation5], 1 }
 0xb42   :  { %1382 = vsyncpa [#allocation16], 1 }

</bundles_post_ra>
